<compile_context>
chip_gen: v7x
topology: tpu7x:2x2x1
jax: 0.10.0
libtpu: 0.0.40
codegen_flags: <defaults>
</compile_context>

<pallas_src>
import jax
import jax.numpy as jnp
from jax.experimental import pallas as pl
from jax.experimental.pallas import tpu as pltpu


def _round_up(x, m):
    return ((x + m - 1) // m) * m


# ---------------------------------------------------------------------------
# Kernel: fused 4-layer hyper-network + mixing, one batch block per grid step.
# Weight slab layout (rows):
#   [0       : d1      ]  layer-1 weights  [w11 | v11]      (input dim d1)
#   [d1      : d1 +  C ]  layer-2 weights  blockdiag(w12, v12)
#   [d1 +  C : d1 + 2C ]  layer-3 weights  blockdiag(w13, v13)
#   [d1 + 2C : d1 + 3C ]  layer-4 weights  blockdiag(w14, v14) -> cols 0:3 | 3:4
# Unused entries are zero, so full-width matmuls reproduce the exact reference
# math (zero activations x zero weights contribute nothing).
# ---------------------------------------------------------------------------
def qmix_kernel(state_ref, q_ref, h_ref, w_ref, b_ref, out_ref):
    d1 = state_ref.shape[1]          # padded state dim
    C = w_ref.shape[1]               # padded hidden width (>= 16*D, mult of 128)

    s = state_ref[...]               # [Bb, d1]
    bias = b_ref[...]                # [8, C]  (rows 0..3 used)

    # layer 1 (both branches fused side-by-side), relu
    h = jnp.maximum(
        jnp.dot(s, w_ref[0:d1, :], preferred_element_type=jnp.float32)
        + bias[0:1, :], 0.0)
    # layer 2 (block-diagonal), relu
    h = jnp.maximum(
        jnp.dot(h, w_ref[d1:d1 + C, :], preferred_element_type=jnp.float32)
        + bias[1:2, :], 0.0)
    # layer 3 (block-diagonal), relu
    h = jnp.maximum(
        jnp.dot(h, w_ref[d1 + C:d1 + 2 * C, :], preferred_element_type=jnp.float32)
        + bias[2:3, :], 0.0)
    # layer 4 (block-diagonal, no relu): cols 0:3 = w-branch (pre-abs), col 3 = b
    y = jnp.dot(h, w_ref[d1 + 2 * C:d1 + 3 * C, :],
                preferred_element_type=jnp.float32) + bias[3:4, :]

    mix_w = jnp.abs(y[:, 0:3])                       # [Bb, 3]
    mix_b = y[:, 3:4]                                # [Bb, 1]
    qh = q_ref[...] - h_ref[...]                     # [Bb, 3]
    qt = jnp.sum(qh * mix_w, axis=1, keepdims=True) + mix_b   # [Bb, 1]

    # lane-dense store; wrapper slices column 0
    out_ref[...] = jnp.broadcast_to(qt, out_ref.shape)


# ---------------------------------------------------------------------------
# Parameter packing: 8 (weight, bias) pairs -> one weight slab + one bias slab.
# Weights are stored [in, out]; biases [1, out].
# ---------------------------------------------------------------------------
def pack_qmix_params(params, state_dim):
    D = state_dim
    d1 = _round_up(D, 8)                  # padded layer-1 input dim
    C = _round_up(16 * D, 128)            # padded hidden width
    R = d1 + 3 * C

    w11, bw11 = params["w11"]
    w12, bw12 = params["w12"]
    w13, bw13 = params["w13"]
    w14, bw14 = params["w14"]
    v11, bv11 = params["b11"]
    v12, bv12 = params["b12"]
    v13, bv13 = params["b13"]
    v14, bv14 = params["b14"]

    W = jnp.zeros((R, C), jnp.float32)
    # layer 1: [w11 | v11] in rows [0:D]
    W = W.at[0:D, 0:2 * D].set(w11)
    W = W.at[0:D, 2 * D:4 * D].set(v11)
    # layer 2: block diagonal
    r = d1
    W = W.at[r:r + 2 * D, 0:4 * D].set(w12)
    W = W.at[r + 2 * D:r + 4 * D, 4 * D:8 * D].set(v12)
    # layer 3: block diagonal
    r = d1 + C
    W = W.at[r:r + 4 * D, 0:8 * D].set(w13)
    W = W.at[r + 4 * D:r + 8 * D, 8 * D:16 * D].set(v13)
    # layer 4: block diagonal -> output cols [0:3] (w) and [3:4] (b)
    r = d1 + 2 * C
    W = W.at[r:r + 8 * D, 0:3].set(w14)
    W = W.at[r + 8 * D:r + 16 * D, 3:4].set(v14)

    Bs = jnp.zeros((8, C), jnp.float32)
    Bs = Bs.at[0, 0:2 * D].set(bw11[0])
    Bs = Bs.at[0, 2 * D:4 * D].set(bv11[0])
    Bs = Bs.at[1, 0:4 * D].set(bw12[0])
    Bs = Bs.at[1, 4 * D:8 * D].set(bv12[0])
    Bs = Bs.at[2, 0:8 * D].set(bw13[0])
    Bs = Bs.at[2, 8 * D:16 * D].set(bv13[0])
    Bs = Bs.at[3, 0:3].set(bw14[0])
    Bs = Bs.at[3, 3:4].set(bv14[0])

    return W, Bs, d1, C


# ---------------------------------------------------------------------------
# Wrapper: pad batch, pack params, launch batched kernel.
# ---------------------------------------------------------------------------
def qmix_forward(params, state, q_list, H=None):
    B, D = state.shape
    if H is None:
        H = jnp.zeros_like(q_list)
    # Validate/broadcast H against q_list (PyTorch default is zeros(130, 3)).
    H = jnp.broadcast_to(H.astype(q_list.dtype), q_list.shape)

    W, Bs, d1, C = pack_qmix_params(params, D)
    R = W.shape[0]

    # batch tiling: blocks of up to 128 rows, grid parallel over blocks
    B_pad = _round_up(B, 8)
    block_b = min(128, B_pad)
    B_pad = _round_up(B_pad, block_b)
    nb = B_pad // block_b

    state_p = jnp.pad(state.astype(jnp.float32),
                      ((0, B_pad - B), (0, d1 - D)))
    q_p = jnp.pad(q_list.astype(jnp.float32), ((0, B_pad - B), (0, 0)))
    h_p = jnp.pad(H.astype(jnp.float32), ((0, B_pad - B), (0, 0)))
    nq = q_p.shape[1]

    out = pl.pallas_call(
        qmix_kernel,
        out_shape=jax.ShapeDtypeStruct((B_pad, 128), jnp.float32),
        grid=(nb,),
        in_specs=[
            pl.BlockSpec((block_b, d1), lambda i: (i, 0)),   # state
            pl.BlockSpec((block_b, nq), lambda i: (i, 0)),   # q_list
            pl.BlockSpec((block_b, nq), lambda i: (i, 0)),   # H
            pl.BlockSpec((R, C), lambda i: (0, 0)),          # weight slab (resident)
            pl.BlockSpec((8, C), lambda i: (0, 0)),          # bias slab   (resident)
        ],
        out_specs=pl.BlockSpec((block_b, 128), lambda i: (i, 0)),
        compiler_params=pltpu.CompilerParams(
            dimension_semantics=("parallel",)),
    )(state_p, q_p, h_p, W, Bs)

    return out[:B, :1]


# ---------------------------------------------------------------------------
# Reference (pure JAX, un-fused) and init helpers.
# ---------------------------------------------------------------------------
def init_linear(key, in_f, out_f):
    kw, kb = jax.random.split(key)
    bound = 1.0 / jnp.sqrt(in_f)
    w = jax.random.uniform(kw, (in_f, out_f), jnp.float32, -bound, bound)
    b = jax.random.uniform(kb, (1, out_f), jnp.float32, -bound, bound)
    return w, b


def reference_forward(params, state, q_list, H):
    def lin(x, p):
        return jnp.dot(x, p[0]) + p[1]
    w = jax.nn.relu(lin(state, params["w11"]))
    w = jax.nn.relu(lin(w, params["w12"]))
    w = jax.nn.relu(lin(w, params["w13"]))
    w = jnp.abs(lin(w, params["w14"]))
    b = jax.nn.relu(lin(state, params["b11"]))
    b = jax.nn.relu(lin(b, params["b12"]))
    b = jax.nn.relu(lin(b, params["b13"]))
    b = lin(b, params["b14"])
    q = q_list - H
    return jnp.sum(q * w, axis=1, keepdims=True) + b


if __name__ == "__main__":
    state_dim = 16      # D: hyper-net widths 2D=32, 4D=64, 8D=128
    batch = 130         # matches the module's default H = zeros(130, 3)

    key = jax.random.PRNGKey(0)
    keys = jax.random.split(key, 10)

    params = {
        "w11": init_linear(keys[0], state_dim, 2 * state_dim),
        "w12": init_linear(keys[1], 2 * state_dim, 4 * state_dim),
        "w13": init_linear(keys[2], 4 * state_dim, 8 * state_dim),
        "w14": init_linear(keys[3], 8 * state_dim, 3),
        "b11": init_linear(keys[4], state_dim, 2 * state_dim),
        "b12": init_linear(keys[5], 2 * state_dim, 4 * state_dim),
        "b13": init_linear(keys[6], 4 * state_dim, 8 * state_dim),
        "b14": init_linear(keys[7], 8 * state_dim, 1),
    }

    state = jax.random.normal(keys[8], (batch, state_dim), jnp.float32)
    q_list = jax.random.normal(keys[9], (batch, 3), jnp.float32)
    H = jnp.zeros((batch, 3), jnp.float32)   # module default semantics

    fwd = jax.jit(qmix_forward)
    out = fwd(params, state, q_list, H)
    out = jax.block_until_ready(out)

    ref = reference_forward(params, state, q_list, H)
    assert out.shape == (batch, 1)
    assert jnp.allclose(out, ref, atol=1e-3, rtol=1e-3), float(
        jnp.max(jnp.abs(out - ref)))

    print("KERNEL_OK")
</pallas_src>

<mosaic_0001>
module attributes {stable_mosaic.version = 11 : i64} {
  func.func @qmix_kernel(%arg0: i32, %arg1: memref<128x16xf32, #tpu.memory_space<vmem>>, %arg2: memref<128x3xf32, #tpu.memory_space<vmem>>, %arg3: memref<128x3xf32, #tpu.memory_space<vmem>>, %arg4: memref<784x256xf32, #tpu.memory_space<vmem>>, %arg5: memref<8x256xf32, #tpu.memory_space<vmem>>, %arg6: memref<128x128xf32, #tpu.memory_space<vmem>>) attributes {dimension_semantics = [#tpu.dimension_semantics<parallel>], iteration_bounds = array<i64: 2>, scalar_prefetch = 0 : i64, scratch_operands = 0 : i64, tpu.core_type = #tpu.core_type<tc>, window_params = [{transform_indices = @transform_0, window_bounds = array<i64: 128, 16>}, {transform_indices = @transform_1, window_bounds = array<i64: 128, 3>}, {transform_indices = @transform_2, window_bounds = array<i64: 128, 3>}, {pipeline_mode = #tpu.pipeline_mode<synchronous>, transform_indices = @transform_3, window_bounds = array<i64: 784, 256>}, {pipeline_mode = #tpu.pipeline_mode<synchronous>, transform_indices = @transform_4, window_bounds = array<i64: 8, 256>}, {transform_indices = @transform_5, window_bounds = array<i64: 128, 128>}]} {
    %c0 = arith.constant 0 : index
    %c0_0 = arith.constant 0 : index
    %0 = vector.load %arg1[%c0, %c0_0] : memref<128x16xf32, #tpu.memory_space<vmem>>, vector<128x16xf32>
    %c0_1 = arith.constant 0 : index
    %c0_2 = arith.constant 0 : index
    %1 = vector.load %arg5[%c0_1, %c0_2] : memref<8x256xf32, #tpu.memory_space<vmem>>, vector<8x256xf32>
    %c0_3 = arith.constant 0 : index
    %c0_4 = arith.constant 0 : index
    %2 = vector.load %arg4[%c0_3, %c0_4] : memref<784x256xf32, #tpu.memory_space<vmem>>, vector<16x256xf32>
    %cst = arith.constant dense<0.000000e+00> : vector<128x256xf32>
    %3 = tpu.matmul %0, %2, %cst {dimension_numbers = #tpu.dot_dimension_numbers<[1], [0], [0], [1], [0, 0, 1, 1], [], []>} : vector<128x16xf32>, vector<16x256xf32>, vector<128x256xf32> -> vector<128x256xf32>
    %4 = vector.extract_strided_slice %1 {offsets = [0, 0], sizes = [1, 256], strides = [1, 1]} : vector<8x256xf32> to vector<1x256xf32>
    %5 = vector.broadcast %4 : vector<1x256xf32> to vector<128x256xf32>
    %6 = arith.addf %3, %5 : vector<128x256xf32>
    %cst_5 = arith.constant 0.000000e+00 : f32
    %7 = vector.broadcast %cst_5 : f32 to vector<128x256xf32>
    %8 = arith.maximumf %6, %7 : vector<128x256xf32>
    %c16 = arith.constant 16 : index
    %c0_6 = arith.constant 0 : index
    %9 = vector.load %arg4[%c16, %c0_6] : memref<784x256xf32, #tpu.memory_space<vmem>>, vector<256x256xf32>
    %cst_7 = arith.constant dense<0.000000e+00> : vector<128x256xf32>
    %10 = tpu.matmul %8, %9, %cst_7 {dimension_numbers = #tpu.dot_dimension_numbers<[1], [0], [0], [1], [0, 0, 1, 1], [], []>} : vector<128x256xf32>, vector<256x256xf32>, vector<128x256xf32> -> vector<128x256xf32>
    %11 = vector.extract_strided_slice %1 {offsets = [1, 0], sizes = [1, 256], strides = [1, 1]} : vector<8x256xf32> to vector<1x256xf32>
    %12 = vector.broadcast %11 : vector<1x256xf32> to vector<128x256xf32>
    %13 = arith.addf %10, %12 : vector<128x256xf32>
    %cst_8 = arith.constant 0.000000e+00 : f32
    %14 = vector.broadcast %cst_8 : f32 to vector<128x256xf32>
    %15 = arith.maximumf %13, %14 : vector<128x256xf32>
    %c272 = arith.constant 272 : index
    %c0_9 = arith.constant 0 : index
    %16 = vector.load %arg4[%c272, %c0_9] : memref<784x256xf32, #tpu.memory_space<vmem>>, vector<256x256xf32>
    %cst_10 = arith.constant dense<0.000000e+00> : vector<128x256xf32>
    %17 = tpu.matmul %15, %16, %cst_10 {dimension_numbers = #tpu.dot_dimension_numbers<[1], [0], [0], [1], [0, 0, 1, 1], [], []>} : vector<128x256xf32>, vector<256x256xf32>, vector<128x256xf32> -> vector<128x256xf32>
    %18 = vector.extract_strided_slice %1 {offsets = [2, 0], sizes = [1, 256], strides = [1, 1]} : vector<8x256xf32> to vector<1x256xf32>
    %19 = vector.broadcast %18 : vector<1x256xf32> to vector<128x256xf32>
    %20 = arith.addf %17, %19 : vector<128x256xf32>
    %cst_11 = arith.constant 0.000000e+00 : f32
    %21 = vector.broadcast %cst_11 : f32 to vector<128x256xf32>
    %22 = arith.maximumf %20, %21 : vector<128x256xf32>
    %c528 = arith.constant 528 : index
    %c0_12 = arith.constant 0 : index
    %23 = vector.load %arg4[%c528, %c0_12] : memref<784x256xf32, #tpu.memory_space<vmem>>, vector<256x256xf32>
    %cst_13 = arith.constant dense<0.000000e+00> : vector<128x256xf32>
    %24 = tpu.matmul %22, %23, %cst_13 {dimension_numbers = #tpu.dot_dimension_numbers<[1], [0], [0], [1], [0, 0, 1, 1], [], []>} : vector<128x256xf32>, vector<256x256xf32>, vector<128x256xf32> -> vector<128x256xf32>
    %25 = vector.extract_strided_slice %1 {offsets = [3, 0], sizes = [1, 256], strides = [1, 1]} : vector<8x256xf32> to vector<1x256xf32>
    %26 = vector.broadcast %25 : vector<1x256xf32> to vector<128x256xf32>
    %27 = arith.addf %24, %26 : vector<128x256xf32>
    %28 = vector.extract_strided_slice %27 {offsets = [0, 0], sizes = [128, 3], strides = [1, 1]} : vector<128x256xf32> to vector<128x3xf32>
    %29 = math.absf %28 : vector<128x3xf32>
    %30 = vector.extract_strided_slice %27 {offsets = [0, 3], sizes = [128, 1], strides = [1, 1]} : vector<128x256xf32> to vector<128x1xf32>
    %c0_14 = arith.constant 0 : index
    %c0_15 = arith.constant 0 : index
    %31 = vector.load %arg2[%c0_14, %c0_15] : memref<128x3xf32, #tpu.memory_space<vmem>>, vector<128x3xf32>
    %c0_16 = arith.constant 0 : index
    %c0_17 = arith.constant 0 : index
    %32 = vector.load %arg3[%c0_16, %c0_17] : memref<128x3xf32, #tpu.memory_space<vmem>>, vector<128x3xf32>
    %33 = arith.subf %31, %32 : vector<128x3xf32>
    %34 = arith.mulf %33, %29 : vector<128x3xf32>
    %cst_18 = arith.constant dense<0.000000e+00> : vector<128xf32>
    %35 = vector.multi_reduction <add>, %34, %cst_18 [1] : vector<128x3xf32> to vector<128xf32>
    %36 = vector.shape_cast %35 : vector<128xf32> to vector<128x1xf32>
    %37 = arith.addf %36, %30 : vector<128x1xf32>
    %38 = vector.shape_cast %37 : vector<128x1xf32> to vector<128x1xf32>
    %39 = vector.broadcast %38 : vector<128x1xf32> to vector<128x128xf32>
    %c0_19 = arith.constant 0 : index
    %c0_20 = arith.constant 0 : index
    %40 = vector.load %arg6[%c0_19, %c0_20] : memref<128x128xf32, #tpu.memory_space<vmem>>, vector<128x128xf32>
    tpu.vector_store %arg6[%c0_19, %c0_20], %39 {strides = array<i32>} : memref<128x128xf32, #tpu.memory_space<vmem>>, vector<128x128xf32>,
    return
  }
  func.func @transform_0(%arg0: i32) -> (i32, i32) {
    %c0_i32 = arith.constant 0 : i32
    %c0_i32_0 = arith.constant 0 : i32
    return %arg0, %c0_i32 : i32, i32
  }
  func.func @transform_1(%arg0: i32) -> (i32, i32) {
    %c0_i32 = arith.constant 0 : i32
    %c0_i32_0 = arith.constant 0 : i32
    return %arg0, %c0_i32 : i32, i32
  }
  func.func @transform_2(%arg0: i32) -> (i32, i32) {
    %c0_i32 = arith.constant 0 : i32
    %c0_i32_0 = arith.constant 0 : i32
    return %arg0, %c0_i32 : i32, i32
  }
  func.func @transform_3(%arg0: i32) -> (i32, i32) {
    %c0_i32 = arith.constant 0 : i32
    %c0_i32_0 = arith.constant 0 : i32
    %c0_i32_1 = arith.constant 0 : i32
    return %c0_i32, %c0_i32_0 : i32, i32
  }
  func.func @transform_4(%arg0: i32) -> (i32, i32) {
    %c0_i32 = arith.constant 0 : i32
    %c0_i32_0 = arith.constant 0 : i32
    %c0_i32_1 = arith.constant 0 : i32
    return %c0_i32, %c0_i32_0 : i32, i32
  }
  func.func @transform_5(%arg0: i32) -> (i32, i32) {
    %c0_i32 = arith.constant 0 : i32
    %c0_i32_0 = arith.constant 0 : i32
    return %arg0, %c0_i32 : i32, i32
  }
}

</mosaic_0001>

<bundles_post_ra>
// kernel: qmix_forward.1
= control target key start
LH: loop header
LB: loop body
LE: loop exit
PB: predicated region body
PF: predicated region fallthrough
CT: control target
= control target key end

     0   :  { %s1920_s18 = smov 0   ;;  %s2980_s0 = inlined_call_operand.vmem [shape: f32[256,16], index: 0, kind: input, shape index: {}]   ;;  %s2981_s1 = inlined_call_operand.vmem [shape: f32[256,3], index: 1, kind: input, shape index: {}]   ;;  %s2982_s2 = inlined_call_operand.vmem [shape: f32[256,3], index: 2, kind: input, shape index: {}]   ;;  %s2983_s3 = inlined_call_operand.vmem [shape: f32[784,256], index: 3, kind: input, shape index: {}]   ;;  %s2984_s4 = inlined_call_operand.vmem [shape: f32[8,256], index: 4, kind: input, shape index: {}]   ;;  %s2985_s5 = inlined_call_operand.vmem [shape: f32[256,128], index: 5, kind: output, shape index: {}]  }
   0x1 LB: > { %s1608_s19 = sadd.s32 4294967295, %s1886_s18   ;;  %p1612_p0 = scmp.ge.s32.totalorder %s1886_s18, 1  ;;  %s1886_s18 = sphi %s1920_s18, %s15_s18  }
   0x2   : > { %p210_p1 = scmp.lt.s32.totalorder %s1886_s18, 3 }
   0x4   : > { %p211_p2 = pnand %p1612_p0, %p210_p1 }
   0x5   : > { %v291_v0 = vld [vmem:[%s2983_s3 + $0x8] sm:$0xff] (!%p211_p2)  ;;  %v293_v1 = vld [vmem:[%s2983_s3 + $0x18] sm:$0xff] (!%p211_p2)  ;;  %v290_v2 = vld [vmem:[%s2983_s3] sm:$0xff] (!%p211_p2)  ;;  %s1613_s26 = sshll.u32 (!%p211_p2), %s1608_s19, 4  ;;  %v1888_v5 = vmov (!%p211_p2), 0.0   ;;  %vm302_vm0 = vcmask (!%p211_p2), 130048  }
   0x6   : > { %214 = sbr.rel (%p211_p2) target bundleno = 1223 (0x4c7), region = 40  ;;  %v1639_v3 = vpack.c.bf16 (!%p211_p2), %v293_v1, %v291_v0  ;;  %v292_v4 = vld [vmem:[%s2983_s3 + $0x10] sm:$0xff] (!%p211_p2)  ;;  %415 = vmatprep.mubr.f32.mxu0 (!%p211_p2), %v1888_v5  ;;  %p249_p3 = scmp.lt.s32.totalorder (!%p211_p2), %s1613_s26, 31  ;;  %v545_v6 = vld [vmem:[%s2983_s3 + $0x28] sm:$0xff] (!%p211_p2)  ;;  %v547_v7 = vld [vmem:[%s2983_s3 + $0x38] sm:$0xff] (!%p211_p2)  ;;  %vm1367_vm1 = vcmask (!%p211_p2), 23552  }
   0x7   : > { %v1641_v8 = vpack.c.bf16 (!%p211_p2), %v292_v4, %v290_v2  ;;  %v1643_v9 = vpack.c.bf16 (!%p211_p2), %v547_v7, %v545_v6  ;;  %v544_v10 = vld [vmem:[%s2983_s3 + $0x20] sm:$0xff] (!%p211_p2)  ;;  %v546_v11 = vld [vmem:[%s2983_s3 + $0x30] sm:$0xff] (!%p211_p2)  ;;  %v549_v12 = vld [vmem:[%s2983_s3 + $0x48] sm:$0xff] (!%p211_p2) }
   0x8   : > { %1640 = vmatprep.subr.bf16.mxu0 (!%p211_p2), %v1639_v3  ;;  %v1645_v13 = vpack.c.bf16 (!%p211_p2), %v546_v11, %v544_v10  ;;  %v551_v14 = vld [vmem:[%s2983_s3 + $0x58] sm:$0xff] (!%p211_p2)  ;;  %v548_v15 = vld [vmem:[%s2983_s3 + $0x40] sm:$0xff] (!%p211_p2)  ;;  %v550_v16 = vld [vmem:[%s2983_s3 + $0x50] sm:$0xff] (!%p211_p2) }
   0x9   : > { %1642 = vmatpush1.bf16.msra.mxu0 (!%p211_p2), %v1641_v8  ;;  %1644 = vmatprep.subr.bf16.mxu1 (!%p211_p2), %v1643_v9  ;;  %v1647_v17 = vpack.c.bf16 (!%p211_p2), %v551_v14, %v549_v12  ;;  %v553_v18 = vld [vmem:[%s2983_s3 + $0x68] sm:$0xff] (!%p211_p2)  ;;  %v555_v19 = vld [vmem:[%s2983_s3 + $0x78] sm:$0xff] (!%p211_p2)  ;;  %v1649_v20 = vpack.c.bf16 (!%p211_p2), %v550_v16, %v548_v15  ;;  %v552_v22 = vld [vmem:[%s2983_s3 + $0x60] sm:$0xff] (!%p211_p2) }
   0xa   : > { %1646 = vmatpush1.bf16.msra.mxu1 (!%p211_p2), %v1645_v13  ;;  %v1651_v21 = vpack.c.bf16 (!%p211_p2), %v555_v19, %v553_v18  ;;  %v554_v23 = vld [vmem:[%s2983_s3 + $0x70] sm:$0xff] (!%p211_p2)  ;;  %v557_v25 = vld [vmem:[%s2983_s3 + $0x88] sm:$0xff] (!%p211_p2)  ;;  %v559_v26 = vld [vmem:[%s2983_s3 + $0x98] sm:$0xff] (!%p211_p2) }
   0xb   : > { %1648 = vmatprep.subr.bf16.mxu1 (!%p211_p2), %v1647_v17  ;;  %v1653_v28 = vpack.c.bf16 (!%p211_p2), %v554_v23, %v552_v22  ;;  %v1655_v29 = vpack.c.bf16 (!%p211_p2), %v559_v26, %v557_v25  ;;  %v556_v30 = vld [vmem:[%s2983_s3 + $0x80] sm:$0xff] (!%p211_p2)  ;;  %v558_v31 = vld [vmem:[%s2983_s3 + $0x90] sm:$0xff] (!%p211_p2)  ;;  %v561_v32 = vld [vmem:[%s2983_s3 + $0xa8] sm:$0xff] (!%p211_p2) }
   0xc   : > { %v563_v33 = vld [vmem:[%s2983_s3 + $0xb8] sm:$0xff] (!%p211_p2)  ;;  %v1657_v35 = vpack.c.bf16 (!%p211_p2), %v558_v31, %v556_v30  ;;  %v560_v37 = vld [vmem:[%s2983_s3 + $0xa0] sm:$0xff] (!%p211_p2)  ;;  %v562_v38 = vld [vmem:[%s2983_s3 + $0xb0] sm:$0xff] (!%p211_p2) }
   0xd   : > { %s2987_s26 = smov (!%p249_p3, %s1613_s26), 31  ;;  %v1659_v36 = vpack.c.bf16 %v563_v33, %v561_v32  ;;  %v565_v39 = vld [vmem:[%s2983_s3 + $0xc8] sm:$0xff]  ;;  %v567_v40 = vld [vmem:[%s2983_s3 + $0xd8] sm:$0xff]  ;;  %v1661_v42 = vpack.c.bf16 %v562_v38, %v560_v37  ;;  %v564_v44 = vld [vmem:[%s2983_s3 + $0xc0] sm:$0xff] }
   0xe   : > { %s1971_s25 = sshll.u32 %s2987_s26, 3  ;;  %1650 = vmatpush1.bf16.msra.mxu1 %v1649_v20  ;;  %v1663_v43 = vpack.c.bf16 %v567_v40, %v565_v39  ;;  %v566_v45 = vld [vmem:[%s2983_s3 + $0xd0] sm:$0xff]  ;;  %v569_v46 = vld [vmem:[%s2983_s3 + $0xe8] sm:$0xff]  ;;  %v571_v47 = vld [vmem:[%s2983_s3 + $0xf8] sm:$0xff] }
   0xf   : > { %s1977_s29 = scalar_lea.vmem %s2980_s0, %s1971_s25  ;;  %1652 = vmatprep.subr.bf16.mxu1 %v1651_v21  ;;  %v1665_v49 = vpack.c.bf16 %v566_v45, %v564_v44  ;;  %v1667_v50 = vpack.c.bf16 %v571_v47, %v569_v46  ;;  %v568_v51 = vld [vmem:[%s2983_s3 + $0xe0] sm:$0xff]  ;;  %v570_v52 = vld [vmem:[%s2983_s3 + $0xf0] sm:$0xff]  ;;  %v573_v53 = vld [vmem:[%s2983_s3 + $0x108] sm:$0xff]  ;;  %s2818_s10 = scalar_lea.vmem %s2981_s1, %s1971_s25 }
  0x10   : > { %v272_v24 = vld [vmem:[%s1977_s29] sm:$0xff]  ;;  %v273_v27 = vld [vmem:[%s1977_s29 + $0x8] sm:$0xff]  ;;  %v274_v34 = vld [vmem:[%s1977_s29 + $0x10] sm:$0xff]  ;;  %v1669_v56 = vpack.c.bf16 %v570_v52, %v568_v51  ;;  %s2824_s13 = scalar_lea.vmem %s2982_s2, %s1971_s25  ;;  %s2959_s19 = scalar_lea.vmem %s2985_s5, %s1971_s25 }
  0x11   : > { %1621 = vmatmul.mubr.msk.f32.vlgmr.msra.gmra.mrb[0].mxu0 %vm302_vm0, %v272_v24  ;;  %v275_v41 = vld [vmem:[%s1977_s29 + $0x18] sm:$0xff]  ;;  %v276_v48 = vld [vmem:[%s1977_s29 + $0x20] sm:$0xff]  ;;  %v277_v55 = vld [vmem:[%s1977_s29 + $0x28] sm:$0xff] }
  0x12   : > { %421 = vmatprep.mubr.f32.mxu0 %v1888_v5  ;;  %1654 = vmatpush1.bf16.msra.mxu1 %v1653_v28  ;;  %v575_v54 = vld [vmem:[%s2983_s3 + $0x118] sm:$0xff]  ;;  %v572_v58 = vld [vmem:[%s2983_s3 + $0x100] sm:$0xff]  ;;  %v574_v59 = vld [vmem:[%s2983_s3 + $0x110] sm:$0xff] }
  0x13   : > { %1656 = vmatprep.subr.bf16.mxu1 %v1655_v29  ;;  %v1671_v57 = vpack.c.bf16 %v575_v54, %v573_v53  ;;  %v577_v60 = vld [vmem:[%s2983_s3 + $0x128] sm:$0xff]  ;;  %v579_v61 = vld [vmem:[%s2983_s3 + $0x138] sm:$0xff]  ;;  %v278_v62 = vld [vmem:[%s1977_s29 + $0x30] sm:$0xff]  ;;  %v1673_v63 = vpack.c.bf16 %v574_v59, %v572_v58 }
  0x14   : > { %v1675_v0 = vpack.c.bf16 %v579_v61, %v577_v60  ;;  %v576_v1 = vld [vmem:[%s2983_s3 + $0x120] sm:$0xff]  ;;  %v578_v2 = vld [vmem:[%s2983_s3 + $0x130] sm:$0xff]  ;;  %v581_v3 = vld [vmem:[%s2983_s3 + $0x148] sm:$0xff] }
  0x15   : > { %1622 = vmatmul.mubr.msk.f32.gmra.mrb[2].mxu0 %vm302_vm0, %v273_v27  ;;  %v583_v4 = vld [vmem:[%s2983_s3 + $0x158] sm:$0xff]  ;;  %v1677_v7 = vpack.c.bf16 %v578_v2, %v576_v1  ;;  %v580_v9 = vld [vmem:[%s2983_s3 + $0x140] sm:$0xff]  ;;  %v582_v10 = vld [vmem:[%s2983_s3 + $0x150] sm:$0xff] }
  0x16   : > { %427 = vmatprep.mubr.f32.mxu0 %v1888_v5  ;;  %1658 = vmatpush1.bf16.msra.mxu1 %v1657_v35  ;;  %v279_v6 = vld [vmem:[%s1977_s29 + $0x38] sm:$0xff]  ;;  %v1679_v8 = vpack.c.bf16 %v583_v4, %v581_v3  ;;  %v585_v11 = vld [vmem:[%s2983_s3 + $0x168] sm:$0xff]  ;;  %v280_v13 = vld [vmem:[%s1977_s29 + $0x40] sm:$0xff]  ;;  %v1681_v14 = vpack.c.bf16 %v582_v10, %v580_v9 }
  0x17   : > { %1660 = vmatprep.subr.bf16.mxu1 %v1659_v36  ;;  %v587_v12 = vld [vmem:[%s2983_s3 + $0x178] sm:$0xff]  ;;  %v584_v16 = vld [vmem:[%s2983_s3 + $0x160] sm:$0xff]  ;;  %v586_v17 = vld [vmem:[%s2983_s3 + $0x170] sm:$0xff] }
  0x18   : > { %v1683_v15 = vpack.c.bf16 %v587_v12, %v585_v11  ;;  %v589_v18 = vld [vmem:[%s2983_s3 + $0x188] sm:$0xff]  ;;  %v591_v19 = vld [vmem:[%s2983_s3 + $0x198] sm:$0xff]  ;;  %v1685_v21 = vpack.c.bf16 %v586_v17, %v584_v16  ;;  %v588_v23 = vld [vmem:[%s2983_s3 + $0x180] sm:$0xff] }
  0x19   : > { %1623 = vmatmul.mubr.msk.f32.gmra.mrb[4].mxu0 %vm302_vm0, %v274_v34  ;;  %v281_v20 = vld [vmem:[%s1977_s29 + $0x48] sm:$0xff]  ;;  %v1687_v22 = vpack.c.bf16 %v591_v19, %v589_v18  ;;  %v590_v24 = vld [vmem:[%s2983_s3 + $0x190] sm:$0xff]  ;;  %v595_v26 = vld [vmem:[%s2983_s3 + $0x1b8] sm:$0xff] }
  0x1a   : > { %433 = vmatprep.mubr.f32.mxu0 %v1888_v5  ;;  %1662 = vmatpush1.bf16.msra.mxu1 %v1661_v42  ;;  %v593_v25 = vld [vmem:[%s2983_s3 + $0x1a8] sm:$0xff]  ;;  %v282_v27 = vld [vmem:[%s1977_s29 + $0x50] sm:$0xff]  ;;  %v1689_v28 = vpack.c.bf16 %v590_v24, %v588_v23  ;;  %v592_v30 = vld [vmem:[%s2983_s3 + $0x1a0] sm:$0xff] }
  0x1b   : > { %1664 = vmatprep.subr.bf16.mxu1 %v1663_v43  ;;  %v1691_v29 = vpack.c.bf16 %v595_v26, %v593_v25  ;;  %v594_v31 = vld [vmem:[%s2983_s3 + $0x1b0] sm:$0xff]  ;;  %v597_v32 = vld [vmem:[%s2983_s3 + $0x1c8] sm:$0xff]  ;;  %v599_v33 = vld [vmem:[%s2983_s3 + $0x1d8] sm:$0xff] }
  0x1c   : > { %v283_v34 = vld [vmem:[%s1977_s29 + $0x58] sm:$0xff]  ;;  %v1693_v35 = vpack.c.bf16 %v594_v31, %v592_v30  ;;  %v1695_v36 = vpack.c.bf16 %v599_v33, %v597_v32  ;;  %v596_v37 = vld [vmem:[%s2983_s3 + $0x1c0] sm:$0xff]  ;;  %v598_v38 = vld [vmem:[%s2983_s3 + $0x1d0] sm:$0xff] }
  0x1d   : > { %1624 = vmatmul.mubr.msk.f32.gmra.mrb[6].mxu0 %vm302_vm0, %v275_v41  ;;  %v601_v39 = vld [vmem:[%s2983_s3 + $0x1e8] sm:$0xff]  ;;  %v603_v40 = vld [vmem:[%s2983_s3 + $0x1f8] sm:$0xff]  ;;  %v284_v41 = vld [vmem:[%s1977_s29 + $0x60] sm:$0xff]  ;;  %v1697_v42 = vpack.c.bf16 %v598_v38, %v596_v37 }
  0x1e   : > { %439 = vmatprep.mubr.f32.mxu0 %v1888_v5  ;;  %1666 = vmatpush1.bf16.msra.mxu1 %v1665_v49  ;;  %v1699_v43 = vpack.c.bf16 %v603_v40, %v601_v39  ;;  %v285_v44 = vld [vmem:[%s1977_s29 + $0x68] sm:$0xff]  ;;  %v286_v45 = vld [vmem:[%s1977_s29 + $0x70] sm:$0xff]  ;;  %v287_v46 = vld [vmem:[%s1977_s29 + $0x78] sm:$0xff] }
  0x1f   : > { %1668 = vmatprep.subr.bf16.mxu1 %v1667_v50  ;;  %v600_v47 = vld [vmem:[%s2983_s3 + $0x1e0] sm:$0xff]  ;;  %v605_v50 = vld [vmem:[%s2983_s3 + $0x208] sm:$0xff]  ;;  %v606_v53 = vld [vmem:[%s2983_s3 + $0x210] sm:$0xff] }
  0x20   : > { %v604_v52 = vld [vmem:[%s2983_s3 + $0x200] sm:$0xff]  ;;  %v811_v59 = vld [vmem:[%s2983_s3 + $0x230] sm:$0xff]  ;;  %v814_v60 = vld [vmem:[%s2983_s3 + $0x248] sm:$0xff] }
  0x21   : > { %1625 = vmatmul.mubr.msk.f32.gmra.mrb[8].mxu0 %vm302_vm0, %v276_v48  ;;  %v602_v48 = vld [vmem:[%s2983_s3 + $0x1f0] sm:$0xff]  ;;  %v1705_v54 = vpack.c.bf16 %v606_v53, %v604_v52  ;;  %v816_v61 = vld [vmem:[%s2983_s3 + $0x258] sm:$0xff]  ;;  %v818_v2 = vld [vmem:[%s2983_s3 + $0x268] sm:$0xff] }
  0x22   : > { %445 = vmatprep.mubr.f32.mxu0 %v1888_v5  ;;  %1670 = vmatpush1.bf16.msra.mxu1 %v1669_v56  ;;  %v1701_v49 = vpack.c.bf16 %v602_v48, %v600_v47  ;;  %v812_v56 = vld [vmem:[%s2983_s3 + $0x238] sm:$0xff]  ;;  %v815_v1 = vld [vmem:[%s2983_s3 + $0x250] sm:$0xff]  ;;  %v822_v9 = vld [vmem:[%s2983_s3 + $0x288] sm:$0xff] }
  0x23   : > { %1672 = vmatprep.subr.bf16.mxu1 %v1671_v57  ;;  %v809_v57 = vld [vmem:[%s2983_s3 + $0x220] sm:$0xff]  ;;  %v820_v3 = vld [vmem:[%s2983_s3 + $0x278] sm:$0xff]  ;;  %v831_v26 = vld [vmem:[%s2983_s3 + $0x2d0] sm:$0xff] }
  0x24   : > { %v824_v10 = vld [vmem:[%s2983_s3 + $0x298] sm:$0xff]  ;;  %v825_v19 = vld [vmem:[%s2983_s3 + $0x2a0] sm:$0xff]  ;;  %v835_v32 = vld [vmem:[%s2983_s3 + $0x2f0] sm:$0xff] }
  0x25   : > { %1626 = vmatmul.mubr.msk.f32.gmra.mrb[10].mxu0 %vm302_vm0, %v277_v55  ;;  %v810_v55 = vld [vmem:[%s2983_s3 + $0x228] sm:$0xff]  ;;  %v1719_v12 = vpack.c.bf16 %v824_v10, %v822_v9  ;;  %v828_v16 = vld [vmem:[%s2983_s3 + $0x2b8] sm:$0xff]  ;;  %v829_v25 = vld [vmem:[%s2983_s3 + $0x2c0] sm:$0xff] }
  0x26   : > { %451 = vmatprep.mubr.f32.mxu0 %v1888_v5  ;;  %1674 = vmatpush1.bf16.msra.mxu1 %v1673_v63  ;;  %v1707_v58 = vpack.c.bf16 %v812_v56, %v810_v55  ;;  %v1711_v63 = vpack.c.bf16 %v816_v61, %v814_v60  ;;  %v833_v31 = vld [vmem:[%s2983_s3 + $0x2e0] sm:$0xff]  ;;  %v838_v33 = vld [vmem:[%s2983_s3 + $0x308] sm:$0xff]  ;;  %v839_v38 = vld [vmem:[%s2983_s3 + $0x310] sm:$0xff] }
  0x27   : > { %1676 = vmatprep.subr.bf16.mxu1 %v1675_v0  ;;  %v813_v0 = vld [vmem:[%s2983_s3 + $0x240] sm:$0xff]  ;;  %v842_v39 = vld [vmem:[%s2983_s3 + $0x328] sm:$0xff]  ;;  %v844_v40 = vld [vmem:[%s2983_s3 + $0x338] sm:$0xff] }
  0x28   : > { %1708 = vmatprep.subr.bf16.mxu0 %v1707_v58  ;;  %v1713_v4 = vpack.c.bf16 %v815_v1, %v813_v0  ;;  %v837_v37 = vld [vmem:[%s2983_s3 + $0x300] sm:$0xff]  ;;  %v851_v55 = vld [vmem:[%s2983_s3 + $0x370] sm:$0xff]  ;;  %v854_v56 = vld [vmem:[%s2983_s3 + $0x388] sm:$0xff] }
  0x29   : > { %1627 = vmatmul.mubr.msk.f32.gmra.mrb[12].mxu0 %vm302_vm0, %v278_v62  ;;  %v1709_v62 = vpack.c.bf16 %v811_v59, %v809_v57  ;;  %v856_v57 = vld [vmem:[%s2983_s3 + $0x398] sm:$0xff]  ;;  %v853_v60 = vld [vmem:[%s2983_s3 + $0x380] sm:$0xff]  ;;  %v855_v61 = vld [vmem:[%s2983_s3 + $0x390] sm:$0xff] }
  0x2a   : > { %457 = vmatprep.mubr.f32.mxu0 %v1888_v5  ;;  %1678 = vmatpush1.bf16.msra.mxu1 %v1677_v7  ;;  %v817_v7 = vld [vmem:[%s2983_s3 + $0x260] sm:$0xff]  ;;  %v1751_v59 = vpack.c.bf16 %v856_v57, %v854_v56  ;;  %v1753_v0 = vpack.c.bf16 %v855_v61, %v853_v60 }
  0x2b   : > { %1680 = vmatprep.subr.bf16.mxu1 %v1679_v8  ;;  %1710 = vmatpush1.bf16.msra.mxu0 %v1709_v62  ;;  %v819_v8 = vld [vmem:[%s2983_s3 + $0x270] sm:$0xff]  ;;  %v858_v62 = vld [vmem:[%s2983_s3 + $0x3a8] sm:$0xff]  ;;  %v861_v10 = vld [vmem:[%s2983_s3 + $0x3c0] sm:$0xff] }
  0x2c   : > { %1712 = vmatprep.subr.bf16.mxu0 %v1711_v63  ;;  %v1717_v11 = vpack.c.bf16 %v819_v8, %v817_v7  ;;  %v860_v63 = vld [vmem:[%s2983_s3 + $0x3b8] sm:$0xff] }
  0x2d   : > { %1628 = vmatmul.mubr.msk.f32.gmra.mrb[14].mxu0 %vm302_vm0, %v279_v6  ;;  %v1715_v6 = vpack.c.bf16 %v820_v3, %v818_v2  ;;  %v1755_v1 = vpack.c.bf16 %v860_v63, %v858_v62  ;;  %v857_v2 = vld [vmem:[%s2983_s3 + $0x3a0] sm:$0xff]  ;;  %v859_v3 = vld [vmem:[%s2983_s3 + $0x3b0] sm:$0xff]  ;;  %v864_v7 = vld [vmem:[%s2983_s3 + $0x3d8] sm:$0xff] }
  0x2e   : > { %463 = vmatprep.mubr.f32.mxu0 %v1888_v5  ;;  %1682 = vmatpush1.bf16.msra.mxu1 %v1681_v14  ;;  %v823_v14 = vld [vmem:[%s2983_s3 + $0x290] sm:$0xff]  ;;  %v1757_v8 = vpack.c.bf16 %v859_v3, %v857_v2 }
  0x2f   : > { %1684 = vmatprep.subr.bf16.mxu1 %v1683_v15  ;;  %1714 = vmatpush1.bf16.msra.mxu0 %v1713_v4  ;;  %v826_v15 = vld [vmem:[%s2983_s3 + $0x2a8] sm:$0xff]  ;;  %v294_v4 = vlaneseq }
  0x30   : > { %1716 = vmatprep.subr.bf16.mxu0 %v1715_v6  ;;  %v1723_v18 = vpack.c.bf16 %v828_v16, %v826_v15  ;;  %v862_v6 = vld [vmem:[%s2983_s3 + $0x3c8] sm:$0xff] }
  0x31   : > { %1629 = vmatmul.mubr.msk.f32.gmra.mrb[16].mxu0 %vm302_vm0, %v280_v13  ;;  %v821_v13 = vld [vmem:[%s2983_s3 + $0x280] sm:$0xff]  ;;  %v1759_v9 = vpack.c.bf16 %v864_v7, %v862_v6 }
  0x32   : > { %469 = vmatprep.mubr.f32.mxu0 %v1888_v5  ;;  %1686 = vmatpush1.bf16.msra.mxu1 %v1685_v21  ;;  %v1721_v17 = vpack.c.bf16 %v823_v14, %v821_v13  ;;  %v830_v21 = vld [vmem:[%s2983_s3 + $0x2c8] sm:$0xff]  ;;  %v868_v14 = vld [vmem:[%s2983_s3 + $0x3f8] sm:$0xff] }
  0x33   : > { %1688 = vmatprep.subr.bf16.mxu1 %v1687_v22  ;;  %1718 = vmatpush1.bf16.msra.mxu0 %v1717_v11  ;;  %v832_v22 = vld [vmem:[%s2983_s3 + $0x2d8] sm:$0xff]  ;;  %v863_v11 = vld [vmem:[%s2983_s3 + $0x3d0] sm:$0xff]  ;;  %v866_v13 = vld [vmem:[%s2983_s3 + $0x3e8] sm:$0xff] }
  0x34   : > { %1720 = vmatprep.subr.bf16.mxu0 %v1719_v12  ;;  %v1727_v24 = vpack.c.bf16 %v832_v22, %v830_v21  ;;  %v2356_v12 = vshrl.u32 %v294_v4, 7  ;;  %v1761_v15 = vpack.c.bf16 %v863_v11, %v861_v10  ;;  %v1763_v16 = vpack.c.bf16 %v868_v14, %v866_v13  ;;  %v2379_v21 = vld [vmem:[%s2984_s4 + $0x8] sm:$0xff] }
  0x35   : > { %1630 = vmatmul.mubr.msk.f32.gmra.mrb[18].mxu0 %vm302_vm0, %v281_v20  ;;  %v827_v20 = vld [vmem:[%s2983_s3 + $0x2b0] sm:$0xff] }
  0x36   : > { %475 = vmatprep.mubr.f32.mxu0 %v1888_v5  ;;  %1690 = vmatpush1.bf16.msra.mxu1 %v1689_v28  ;;  %v1725_v23 = vpack.c.bf16 %v827_v20, %v825_v19  ;;  %v836_v28 = vld [vmem:[%s2983_s3 + $0x2f8] sm:$0xff]  ;;  %v296_v19 = vsub.s32 0, %v2356_v12  ;;  %v2374_v20 = vld [vmem:[%s2984_s4] sm:$0xff] }
  0x37   : > { %1692 = vmatprep.subr.bf16.mxu1 %v1691_v29  ;;  %1722 = vmatpush1.bf16.msra.mxu0 %v1721_v17  ;;  %v1729_v29 = vpack.c.bf16 %v831_v26, %v829_v25  ;;  %v865_v17 = vld [vmem:[%s2983_s3 + $0x3e0] sm:$0xff] }
  0x38   : > { %1724 = vmatprep.subr.bf16.mxu0 %v1723_v18  ;;  %v867_v18 = vld [vmem:[%s2983_s3 + $0x3f0] sm:$0xff] }
  0x39   : > { %1631 = vmatmul.mubr.msk.f32.gmra.mrb[20].mxu0 %vm302_vm0, %v282_v27  ;;  %v834_v27 = vld [vmem:[%s2983_s3 + $0x2e8] sm:$0xff]  ;;  %v1765_v22 = vpack.c.bf16 %v867_v18, %v865_v17 }
  0x3a   : > { %481 = vmatprep.mubr.f32.mxu0 %v1888_v5  ;;  %1694 = vmatpush1.bf16.msra.mxu1 %v1693_v35  ;;  %v1731_v30 = vpack.c.bf16 %v836_v28, %v834_v27  ;;  %v1733_v35 = vpack.c.bf16 %v835_v32, %v833_v31 }
  0x3b   : > { %1696 = vmatprep.subr.bf16.mxu1 %v1695_v36  ;;  %1726 = vmatpush1.bf16.msra.mxu0 %v1725_v23  ;;  %v2382_v23 = vrot.slane %v2374_v20, %v296_v19 }
  0x3c   : > { %1728 = vmatprep.subr.bf16.mxu0 %v1727_v24  ;;  %v2385_v24 = vrot.slane %v2379_v21, %v296_v19 }
  0x3d   : > { %1632 = vmatmul.mubr.msk.f32.gmra.mrb[22].mxu0 %vm302_vm0, %v283_v34  ;;  %v840_v34 = vld [vmem:[%s2983_s3 + $0x318] sm:$0xff] }
  0x3e   : > { %487 = vmatprep.mubr.f32.mxu0 %v1888_v5  ;;  %1698 = vmatpush1.bf16.msra.mxu1 %v1697_v42  ;;  %v1735_v36 = vpack.c.bf16 %v840_v34, %v838_v33  ;;  %v1739_v42 = vpack.c.bf16 %v844_v40, %v842_v39 }
  0x3f   : > { %1700 = vmatprep.subr.bf16.mxu1 %v1699_v43  ;;  %1730 = vmatpush1.bf16.msra.mxu0 %v1729_v29  ;;  %v841_v43 = vld [vmem:[%s2983_s3 + $0x320] sm:$0xff] }
  0x40   : > { %1732 = vmatprep.subr.bf16.mxu0 %v1731_v30 }
  0x41   : > { %1633 = vmatmul.mubr.msk.f32.gmra.mrb[24].mxu0 %vm302_vm0, %v284_v41  ;;  %v1737_v41 = vpack.c.bf16 %v839_v38, %v837_v37 }
  0x42   : > { %493 = vmatprep.mubr.f32.mxu0 %v1888_v5  ;;  %1702 = vmatpush1.bf16.msra.mxu1 %v1701_v49  ;;  %v845_v49 = vld [vmem:[%s2983_s3 + $0x340] sm:$0xff] }
  0x43   : > { %1734 = vmatpush1.bf16.msra.mxu0 %v1733_v35 }
  0x44   : > { %1736 = vmatprep.subr.bf16.mxu0 %v1735_v36 }
  0x45   : > { %1634 = vmatmul.mubr.msk.f32.gmra.mrb[26].mxu0 %vm302_vm0, %v285_v44  ;;  %v843_v44 = vld [vmem:[%s2983_s3 + $0x330] sm:$0xff] }
  0x46   : > { %499 = vmatprep.mubr.f32.mxu0 %v1888_v5  ;;  %v1741_v47 = vpack.c.bf16 %v843_v44, %v841_v43 }
  0x47   : > { %1738 = vmatpush1.bf16.msra.mxu0 %v1737_v41 }
  0x48   : > { %1740 = vmatprep.subr.bf16.mxu0 %v1739_v42 }
  0x49   : > { %1635 = vmatmul.mubr.msk.f32.gmra.mrb[28].mxu0 %vm302_vm0, %v286_v45  ;;  %v846_v45 = vld [vmem:[%s2983_s3 + $0x348] sm:$0xff] }
  0x4a   : > { %505 = vmatprep.mubr.f32.mxu0 %v1888_v5  ;;  %v607_v5 = vld [vmem:[%s2983_s3 + $0x218] sm:$0xff] }
  0x4b   : > { %v1703_v51 = vpack.c.bf16 %v607_v5, %v605_v50  ;;  %v847_v50 = vld [vmem:[%s2983_s3 + $0x350] sm:$0xff]  ;;  %v850_v5 = vld [vmem:[%s2983_s3 + $0x368] sm:$0xff]  ;;  %1742 = vmatpush1.bf16.msra.mxu0 %v1741_v47 }
  0x4c   : > { %v1745_v52 = vpack.c.bf16 %v847_v50, %v845_v49 }
  0x4d   : > { %1636 = vmatmul.mubr.msk.f32.gmra.mrb[30].mxu0 %vm302_vm0, %v287_v46  ;;  %1704 = vmatprep.subr.bf16.mxu1 %v1703_v51  ;;  %v848_v46 = vld [vmem:[%s2983_s3 + $0x358] sm:$0xff] }
  0x4e   : > { %1706 = vmatpush1.bf16.msra.mxu1 %v1705_v54  ;;  %v1743_v48 = vpack.c.bf16 %v848_v46, %v846_v45  ;;  %v852_v51 = vld [vmem:[%s2983_s3 + $0x378] sm:$0xff]  ;;  %v849_v54 = vld [vmem:[%s2983_s3 + $0x360] sm:$0xff] }
  0x4f   : > { %v1747_v53 = vpack.c.bf16 %v852_v51, %v850_v5  ;;  %v1749_v58 = vpack.c.bf16 %v851_v55, %v849_v54 }
  0x50   : > { %1744 = vmatprep.subr.bf16.mxu0 %v1743_v48 }
  0x51   : > { %1746 = vmatpush1.bf16.msra.mxu0 %v1745_v52 }
  0x52   : > { %1748 = vmatprep.subr.bf16.mxu0 %v1747_v53 }
  0x55   : > { %1750 = vmatpush1.bf16.msra.mxu0 %v1749_v58 }
  0x56   : > { %1752 = vmatprep.subr.bf16.mxu0 %v1751_v59 }
  0x59   : > { %1754 = vmatpush1.bf16.msra.mxu0 %v1753_v0 }
  0x5a   : > { %1756 = vmatprep.subr.bf16.mxu0 %v1755_v1 }
  0x5d   : > { %1758 = vmatpush1.bf16.msra.mxu0 %v1757_v8 }
  0x5e   : > { %1760 = vmatprep.subr.bf16.mxu0 %v1759_v9 }
  0x61   : > { %1762 = vmatpush1.bf16.msra.mxu0 %v1761_v15 }
  0x62   : > { %1764 = vmatprep.subr.bf16.mxu0 %v1763_v16 }
  0x65   : > { %1766 = vmatpush1.bf16.msra.mxu0 %v1765_v22 }
  0xe4   : > { %v417_v25 = vpop.f32.mrb[0].mxu0 }
  0xe5   : > { %v418_v26 = vadd.f32 %v417_v25, %v2382_v23  ;;  %v419_v27 = vpop.f32.mrb[1].mxu0 }
  0xe6   : > { %v420_v28 = vadd.f32 %v419_v27, %v2385_v24 }
  0xe7   : > { %v512_v31 = vmax.f32 %v418_v26, 0.0 }
  0xe8   : > { %v423_v29 = vpop.f32.mrb[2].mxu0  ;;  %v513_v30 = vmax.f32 %v420_v28, 0.0 }
  0xe9   : > { %v424_v32 = vadd.f32 %v423_v29, %v2382_v23  ;;  %v425_v33 = vpop.f32.mrb[3].mxu0 }
  0xea   : > { %v426_v34 = vadd.f32 %v425_v33, %v2385_v24  ;;  %680 = vmatprep.mubr.f32.mxu1 %v513_v30 }
  0xeb   : > { %681 = vmatmul.mubr.f32.vlgmr.msra.gmra.mrb[0].mxu1 %v512_v31  ;;  %v514_v37 = vmax.f32 %v424_v32, 0.0 }
  0xec   : > { %v515_v35 = vmax.f32 %v426_v34, 0.0  ;;  %v429_v36 = vpop.f32.mrb[4].mxu0 }
  0xed   : > { %v430_v38 = vadd.f32 %v429_v36, %v2382_v23  ;;  %v431_v39 = vpop.f32.mrb[5].mxu0 }
  0xee   : > { %v432_v40 = vadd.f32 %v431_v39, %v2385_v24  ;;  %686 = vmatprep.mubr.f32.mxu1 %v515_v35 }
  0xef   : > { %687 = vmatmul.mubr.f32.gmra.mrb[2].mxu1 %v514_v37  ;;  %v516_v43 = vmax.f32 %v430_v38, 0.0 }
  0xf0   : > { %v517_v41 = vmax.f32 %v432_v40, 0.0  ;;  %v435_v42 = vpop.f32.mrb[6].mxu0 }
  0xf1   : > { %v436_v44 = vadd.f32 %v435_v42, %v2382_v23  ;;  %v437_v45 = vpop.f32.mrb[7].mxu0 }
  0xf2   : > { %v438_v46 = vadd.f32 %v437_v45, %v2385_v24  ;;  %692 = vmatprep.mubr.f32.mxu1 %v517_v41 }
  0xf3   : > { %693 = vmatmul.mubr.f32.gmra.mrb[4].mxu1 %v516_v43  ;;  %v518_v49 = vmax.f32 %v436_v44, 0.0 }
  0xf4   : > { %v519_v47 = vmax.f32 %v438_v46, 0.0  ;;  %v441_v48 = vpop.f32.mrb[8].mxu0 }
  0xf5   : > { %v442_v50 = vadd.f32 %v441_v48, %v2382_v23  ;;  %v443_v5 = vpop.f32.mrb[9].mxu0 }
  0xf6   : > { %v444_v51 = vadd.f32 %v443_v5, %v2385_v24  ;;  %698 = vmatprep.mubr.f32.mxu1 %v519_v47 }
  0xf7   : > { %699 = vmatmul.mubr.f32.gmra.mrb[6].mxu1 %v518_v49  ;;  %v520_v54 = vmax.f32 %v442_v50, 0.0 }
  0xf8   : > { %v521_v52 = vmax.f32 %v444_v51, 0.0  ;;  %v447_v53 = vpop.f32.mrb[10].mxu0 }
  0xf9   : > { %v448_v55 = vadd.f32 %v447_v53, %v2382_v23  ;;  %v449_v56 = vpop.f32.mrb[11].mxu0 }
  0xfa   : > { %v450_v57 = vadd.f32 %v449_v56, %v2385_v24  ;;  %704 = vmatprep.mubr.f32.mxu1 %v521_v52 }
  0xfb   : > { %705 = vmatmul.mubr.f32.gmra.mrb[8].mxu1 %v520_v54  ;;  %v522_v60 = vmax.f32 %v448_v55, 0.0 }
  0xfc   : > { %v523_v58 = vmax.f32 %v450_v57, 0.0  ;;  %v453_v59 = vpop.f32.mrb[12].mxu0 }
  0xfd   : > { %v454_v61 = vadd.f32 %v453_v59, %v2382_v23  ;;  %v455_v62 = vpop.f32.mrb[13].mxu0 }
  0xfe   : > { %v456_v63 = vadd.f32 %v455_v62, %v2385_v24  ;;  %710 = vmatprep.mubr.f32.mxu1 %v523_v58  ;;  %v872_v62 = vld [vmem:[%s2983_s3 + $0x418] sm:$0xff] }
  0xff   : > { %711 = vmatmul.mubr.f32.gmra.mrb[10].mxu1 %v522_v60  ;;  %v524_v2 = vmax.f32 %v454_v61, 0.0  ;;  %v870_v61 = vld [vmem:[%s2983_s3 + $0x408] sm:$0xff] }
 0x100   : > { %v525_v0 = vmax.f32 %v456_v63, 0.0  ;;  %v459_v1 = vpop.f32.mrb[14].mxu0  ;;  %v1767_v63 = vpack.c.bf16 %v872_v62, %v870_v61 }
 0x101   : > { %v460_v3 = vadd.f32 %v459_v1, %v2382_v23  ;;  %v461_v4 = vpop.f32.mrb[15].mxu0  ;;  %v1075_v1 = vld [vmem:[%s2983_s3 + $0x428] sm:$0xff] }
 0x102   : > { %v462_v6 = vadd.f32 %v461_v4, %v2385_v24  ;;  %716 = vmatprep.mubr.f32.mxu1 %v525_v0  ;;  %1768 = vmatprep.subr.bf16.mxu0 %v1767_v63  ;;  %v1110_v63 = vld [vmem:[%s2983_s3 + $0x540] sm:$0xff] }
 0x103   : > { %717 = vmatmul.mubr.f32.gmra.mrb[12].mxu1 %v524_v2  ;;  %v526_v9 = vmax.f32 %v460_v3, 0.0  ;;  %v1077_v2 = vld [vmem:[%s2983_s3 + $0x438] sm:$0xff]  ;;  %v1074_v3 = vld [vmem:[%s2983_s3 + $0x420] sm:$0xff] }
 0x104   : > { %v527_v7 = vmax.f32 %v462_v6, 0.0  ;;  %v465_v8 = vpop.f32.mrb[16].mxu0  ;;  %v1771_v4 = vpack.c.bf16 %v1077_v2, %v1075_v1  ;;  %v1076_v6 = vld [vmem:[%s2983_s3 + $0x430] sm:$0xff] }
 0x105   : > { %v466_v10 = vadd.f32 %v465_v8, %v2382_v23  ;;  %v467_v11 = vpop.f32.mrb[17].mxu0  ;;  %v1081_v8 = vld [vmem:[%s2983_s3 + $0x458] sm:$0xff] }
 0x106   : > { %v468_v13 = vadd.f32 %v467_v11, %v2385_v24  ;;  %722 = vmatprep.mubr.f32.mxu1 %v527_v7  ;;  %v1079_v7 = vld [vmem:[%s2983_s3 + $0x448] sm:$0xff]  ;;  %v1078_v11 = vld [vmem:[%s2983_s3 + $0x440] sm:$0xff]  ;;  %1835 = vmatprep.subr.bf16.mxu1 %v1771_v4 }
 0x107   : > { %723 = vmatmul.mubr.f32.gmra.mrb[14].mxu1 %v526_v9  ;;  %v528_v16 = vmax.f32 %v466_v10, 0.0  ;;  %v2449_v9 = vpack.c.bf16 %v1076_v6, %v1074_v3  ;;  %v2451_v10 = vpack.c.bf16 %v1081_v8, %v1079_v7  ;;  %v1114_v3 = vld [vmem:[%s2983_s3 + $0x560] sm:$0xff]  ;;  %v1119_v6 = vld [vmem:[%s2983_s3 + $0x588] sm:$0xff]  ;;  %v1121_v7 = vld [vmem:[%s2983_s3 + $0x598] sm:$0xff] }
 0x108   : > { %v529_v14 = vmax.f32 %v468_v13, 0.0  ;;  %v471_v15 = vpop.f32.mrb[18].mxu0  ;;  %v1080_v13 = vld [vmem:[%s2983_s3 + $0x450] sm:$0xff] }
 0x109   : > { %v472_v17 = vadd.f32 %v471_v15, %v2382_v23  ;;  %v473_v18 = vpop.f32.mrb[19].mxu0  ;;  %v1085_v15 = vld [vmem:[%s2983_s3 + $0x478] sm:$0xff]  ;;  %1851 = vmatpush1.bf16.msra.mxu1 %v2449_v9 }
 0x10a   : > { %v474_v19 = vadd.f32 %v473_v18, %v2385_v24  ;;  %728 = vmatprep.mubr.f32.mxu1 %v529_v14  ;;  %v1083_v14 = vld [vmem:[%s2983_s3 + $0x468] sm:$0xff]  ;;  %1836 = vmatprep.subr.bf16.mxu1 %v2451_v10  ;;  %v1082_v18 = vld [vmem:[%s2983_s3 + $0x460] sm:$0xff] }
 0x10b   : > { %729 = vmatmul.mubr.f32.gmra.mrb[16].mxu1 %v528_v16  ;;  %v530_v26 = vmax.f32 %v472_v17, 0.0  ;;  %v2467_v16 = vpack.c.bf16 %v1080_v13, %v1078_v11  ;;  %v2469_v17 = vpack.c.bf16 %v1085_v15, %v1083_v14  ;;  %v2631_v11 = vpack.c.bf16 %v1121_v7, %v1119_v6  ;;  %v1118_v13 = vld [vmem:[%s2983_s3 + $0x580] sm:$0xff]  ;;  %v1120_v14 = vld [vmem:[%s2983_s3 + $0x590] sm:$0xff]  ;;  %v1123_v15 = vld [vmem:[%s2983_s3 + $0x5a8] sm:$0xff] }
 0x10c   : > { %v531_v22 = vmax.f32 %v474_v19, 0.0  ;;  %v477_v25 = vpop.f32.mrb[20].mxu0  ;;  %v1084_v19 = vld [vmem:[%s2983_s3 + $0x470] sm:$0xff] }
 0x10d   : > { %v478_v27 = vadd.f32 %v477_v25, %v2382_v23  ;;  %v479_v28 = vpop.f32.mrb[21].mxu0  ;;  %v1089_v25 = vld [vmem:[%s2983_s3 + $0x498] sm:$0xff]  ;;  %1852 = vmatpush1.bf16.msra.mxu1 %v2467_v16 }
 0x10e   : > { %v480_v29 = vadd.f32 %v479_v28, %v2385_v24  ;;  %734 = vmatprep.mubr.f32.mxu1 %v531_v22  ;;  %v1087_v22 = vld [vmem:[%s2983_s3 + $0x488] sm:$0xff]  ;;  %1837 = vmatprep.subr.bf16.mxu1 %v2469_v17  ;;  %v1086_v28 = vld [vmem:[%s2983_s3 + $0x480] sm:$0xff] }
 0x10f   : > { %735 = vmatmul.mubr.f32.gmra.mrb[18].mxu1 %v530_v26  ;;  %v532_v32 = vmax.f32 %v478_v27, 0.0  ;;  %v2485_v26 = vpack.c.bf16 %v1084_v19, %v1082_v18  ;;  %v2487_v27 = vpack.c.bf16 %v1089_v25, %v1087_v22  ;;  %v1125_v18 = vld [vmem:[%s2983_s3 + $0x5b8] sm:$0xff]  ;;  %v2647_v19 = vpack.c.bf16 %v1120_v14, %v1118_v13  ;;  %v1122_v25 = vld [vmem:[%s2983_s3 + $0x5a0] sm:$0xff] }
 0x110   : > { %v533_v30 = vmax.f32 %v480_v29, 0.0  ;;  %v483_v31 = vpop.f32.mrb[22].mxu0  ;;  %v1088_v29 = vld [vmem:[%s2983_s3 + $0x490] sm:$0xff]  ;;  %v2649_v22 = vpack.c.bf16 %v1125_v18, %v1123_v15 }
 0x111   : > { %v484_v33 = vadd.f32 %v483_v31, %v2382_v23  ;;  %v485_v34 = vpop.f32.mrb[23].mxu0  ;;  %v1093_v31 = vld [vmem:[%s2983_s3 + $0x4b8] sm:$0xff]  ;;  %1853 = vmatpush1.bf16.msra.mxu1 %v2485_v26 }
 0x112   : > { %v486_v35 = vadd.f32 %v485_v34, %v2385_v24  ;;  %740 = vmatprep.mubr.f32.mxu1 %v533_v30  ;;  %v1091_v30 = vld [vmem:[%s2983_s3 + $0x4a8] sm:$0xff]  ;;  %1838 = vmatprep.subr.bf16.mxu1 %v2487_v27  ;;  %v1090_v34 = vld [vmem:[%s2983_s3 + $0x4a0] sm:$0xff] }
 0x113   : > { %741 = vmatmul.mubr.f32.gmra.mrb[20].mxu1 %v532_v32  ;;  %v534_v38 = vmax.f32 %v484_v33, 0.0  ;;  %v2503_v32 = vpack.c.bf16 %v1088_v29, %v1086_v28  ;;  %v2505_v33 = vpack.c.bf16 %v1093_v31, %v1091_v30  ;;  %v1124_v28 = vld [vmem:[%s2983_s3 + $0x5b0] sm:$0xff]  ;;  %v1127_v29 = vld [vmem:[%s2983_s3 + $0x5c8] sm:$0xff]  ;;  %v1129_v30 = vld [vmem:[%s2983_s3 + $0x5d8] sm:$0xff] }
 0x114   : > { %v535_v36 = vmax.f32 %v486_v35, 0.0  ;;  %v489_v37 = vpop.f32.mrb[24].mxu0  ;;  %v1092_v35 = vld [vmem:[%s2983_s3 + $0x4b0] sm:$0xff]  ;;  %v2665_v31 = vpack.c.bf16 %v1124_v28, %v1122_v25 }
 0x115   : > { %v490_v39 = vadd.f32 %v489_v37, %v2382_v23  ;;  %v491_v40 = vpop.f32.mrb[25].mxu0  ;;  %v1097_v37 = vld [vmem:[%s2983_s3 + $0x4d8] sm:$0xff]  ;;  %1854 = vmatpush1.bf16.msra.mxu1 %v2503_v32 }
 0x116   : > { %v492_v41 = vadd.f32 %v491_v40, %v2385_v24  ;;  %746 = vmatprep.mubr.f32.mxu1 %v535_v36  ;;  %v1095_v36 = vld [vmem:[%s2983_s3 + $0x4c8] sm:$0xff]  ;;  %1839 = vmatprep.subr.bf16.mxu1 %v2505_v33  ;;  %v1094_v40 = vld [vmem:[%s2983_s3 + $0x4c0] sm:$0xff] }
 0x117   : > { %747 = vmatmul.mubr.f32.gmra.mrb[22].mxu1 %v534_v38  ;;  %v536_v44 = vmax.f32 %v490_v39, 0.0  ;;  %v2521_v38 = vpack.c.bf16 %v1092_v35, %v1090_v34  ;;  %v2523_v39 = vpack.c.bf16 %v1097_v37, %v1095_v36  ;;  %v2667_v34 = vpack.c.bf16 %v1129_v30, %v1127_v29  ;;  %v1126_v35 = vld [vmem:[%s2983_s3 + $0x5c0] sm:$0xff]  ;;  %v1128_v36 = vld [vmem:[%s2983_s3 + $0x5d0] sm:$0xff]  ;;  %v1131_v37 = vld [vmem:[%s2983_s3 + $0x5e8] sm:$0xff] }
 0x118   : > { %v537_v42 = vmax.f32 %v492_v41, 0.0  ;;  %v495_v43 = vpop.f32.mrb[26].mxu0  ;;  %v1096_v41 = vld [vmem:[%s2983_s3 + $0x4d0] sm:$0xff] }
 0x119   : > { %v496_v45 = vadd.f32 %v495_v43, %v2382_v23  ;;  %v497_v46 = vpop.f32.mrb[27].mxu0  ;;  %v1101_v43 = vld [vmem:[%s2983_s3 + $0x4f8] sm:$0xff]  ;;  %1855 = vmatpush1.bf16.msra.mxu1 %v2521_v38 }
 0x11a   : > { %v498_v47 = vadd.f32 %v497_v46, %v2385_v24  ;;  %752 = vmatprep.mubr.f32.mxu1 %v537_v42  ;;  %v1099_v42 = vld [vmem:[%s2983_s3 + $0x4e8] sm:$0xff]  ;;  %1840 = vmatprep.subr.bf16.mxu1 %v2523_v39  ;;  %v1098_v46 = vld [vmem:[%s2983_s3 + $0x4e0] sm:$0xff] }
 0x11b   : > { %753 = vmatmul.mubr.f32.gmra.mrb[24].mxu1 %v536_v44  ;;  %v538_v50 = vmax.f32 %v496_v45, 0.0  ;;  %v2539_v44 = vpack.c.bf16 %v1096_v41, %v1094_v40  ;;  %v2541_v45 = vpack.c.bf16 %v1101_v43, %v1099_v42  ;;  %v1133_v40 = vld [vmem:[%s2983_s3 + $0x5f8] sm:$0xff]  ;;  %v610_v41 = vsub.s32 1, %v2356_v12 }
 0x11c   : > { %v539_v48 = vmax.f32 %v498_v47, 0.0  ;;  %v501_v49 = vpop.f32.mrb[28].mxu0  ;;  %v1100_v47 = vld [vmem:[%s2983_s3 + $0x4f0] sm:$0xff]  ;;  %v2684_v42 = vpack.c.bf16 %v1128_v36, %v1126_v35  ;;  %v2686_v43 = vpack.c.bf16 %v1133_v40, %v1131_v37 }
 0x11d   : > { %v502_v5 = vadd.f32 %v501_v49, %v2382_v23  ;;  %v503_v51 = vpop.f32.mrb[29].mxu0  ;;  %v1105_v49 = vld [vmem:[%s2983_s3 + $0x518] sm:$0xff]  ;;  %1856 = vmatpush1.bf16.msra.mxu1 %v2539_v44 }
 0x11e   : > { %v504_v52 = vadd.f32 %v503_v51, %v2385_v24  ;;  %758 = vmatprep.mubr.f32.mxu1 %v539_v48  ;;  %v1103_v48 = vld [vmem:[%s2983_s3 + $0x508] sm:$0xff]  ;;  %1841 = vmatprep.subr.bf16.mxu1 %v2541_v45  ;;  %v1102_v51 = vld [vmem:[%s2983_s3 + $0x500] sm:$0xff] }
 0x11f   : > { %759 = vmatmul.mubr.f32.gmra.mrb[26].mxu1 %v538_v50  ;;  %v540_v55 = vmax.f32 %v502_v5, 0.0  ;;  %v2557_v50 = vpack.c.bf16 %v1100_v47, %v1098_v46  ;;  %v2559_v5 = vpack.c.bf16 %v1105_v49, %v1103_v48  ;;  %v2691_v46 = vrot.slane %v2374_v20, %v610_v41 }
 0x120   : > { %v541_v53 = vmax.f32 %v504_v52, 0.0  ;;  %v507_v54 = vpop.f32.mrb[30].mxu0  ;;  %v1104_v52 = vld [vmem:[%s2983_s3 + $0x510] sm:$0xff]  ;;  %v2694_v47 = vrot.slane %v2379_v21, %v610_v41 }
 0x121   : > { %v508_v56 = vadd.f32 %v507_v54, %v2382_v23  ;;  %v509_v57 = vpop.f32.mrb[31].mxu0  ;;  %v869_v23 = vld [vmem:[%s2983_s3 + $0x400] sm:$0xff]  ;;  %v1109_v54 = vld [vmem:[%s2983_s3 + $0x538] sm:$0xff]  ;;  %1857 = vmatpush1.bf16.msra.mxu1 %v2557_v50 }
 0x122   : > { %v510_v58 = vadd.f32 %v509_v57, %v2385_v24  ;;  %764 = vmatprep.mubr.f32.mxu1 %v541_v53  ;;  %v871_v24 = vld [vmem:[%s2983_s3 + $0x410] sm:$0xff]  ;;  %v1107_v53 = vld [vmem:[%s2983_s3 + $0x528] sm:$0xff]  ;;  %1842 = vmatprep.subr.bf16.mxu1 %v2559_v5  ;;  %v1106_v57 = vld [vmem:[%s2983_s3 + $0x520] sm:$0xff] }
 0x123   : > { %765 = vmatmul.mubr.f32.gmra.mrb[28].mxu1 %v540_v55  ;;  %v542_v60 = vmax.f32 %v508_v56, 0.0  ;;  %v1769_v0 = vpack.c.bf16 %v871_v24, %v869_v23  ;;  %v2575_v55 = vpack.c.bf16 %v1104_v52, %v1102_v51  ;;  %v2577_v56 = vpack.c.bf16 %v1109_v54, %v1107_v53  ;;  %v1112_v23 = vld [vmem:[%s2983_s3 + $0x550] sm:$0xff]  ;;  %v1115_v24 = vld [vmem:[%s2983_s3 + $0x568] sm:$0xff] }
 0x124   : > { %v543_v59 = vmax.f32 %v510_v58, 0.0  ;;  %v1108_v58 = vld [vmem:[%s2983_s3 + $0x530] sm:$0xff]  ;;  %v2611_v1 = vpack.c.bf16 %v1112_v23, %v1110_v63 }
 0x125   : > { %1770 = vmatpush1.bf16.msra.mxu0 %v1769_v0  ;;  %1858 = vmatpush1.bf16.msra.mxu1 %v2575_v55  ;;  %v2593_v61 = vpack.c.bf16 %v1108_v58, %v1106_v57  ;;  %v1117_v0 = vld [vmem:[%s2983_s3 + $0x578] sm:$0xff] }
 0x126   : > { %770 = vmatprep.mubr.f32.mxu1 %v543_v59  ;;  %1772 = vmatprep.subr.bf16.mxu0 %v1771_v4  ;;  %v1111_v59 = vld [vmem:[%s2983_s3 + $0x548] sm:$0xff]  ;;  %v2613_v2 = vpack.c.bf16 %v1117_v0, %v1115_v24  ;;  %v1116_v4 = vld [vmem:[%s2983_s3 + $0x570] sm:$0xff] }
 0x127   : > { %771 = vmatmul.mubr.f32.gmra.mrb[30].mxu1 %v542_v60  ;;  %v1113_v60 = vld [vmem:[%s2983_s3 + $0x558] sm:$0xff]  ;;  %1843 = vmatprep.subr.bf16.mxu1 %v2577_v56  ;;  %v2629_v8 = vpack.c.bf16 %v1116_v4, %v1114_v3 }
 0x128   : > { %v2595_v62 = vpack.c.bf16 %v1113_v60, %v1111_v59 }
 0x129   : > { %1859 = vmatpush1.bf16.msra.mxu1 %v2593_v61 }
 0x12a   : > { %1844 = vmatprep.subr.bf16.mxu1 %v2595_v62 }
 0x12d   : > { %1860 = vmatpush1.bf16.msra.mxu1 %v2611_v1 }
 0x12e   : > { %1845 = vmatprep.subr.bf16.mxu1 %v2613_v2 }
 0x131   : > { %1861 = vmatpush1.bf16.msra.mxu1 %v2629_v8 }
 0x132   : > { %1846 = vmatprep.subr.bf16.mxu1 %v2631_v11 }
 0x135   : > { %1862 = vmatpush1.bf16.msra.mxu1 %v2647_v19 }
 0x136   : > { %1847 = vmatprep.subr.bf16.mxu1 %v2649_v22 }
 0x139   : > { %1863 = vmatpush1.bf16.msra.mxu1 %v2665_v31 }
 0x13a   : > { %1848 = vmatprep.subr.bf16.mxu1 %v2667_v34 }
 0x13d   : > { %1864 = vmatpush1.bf16.msra.mxu1 %v2684_v42 }
 0x13e   : > { %1849 = vmatprep.subr.bf16.mxu1 %v2686_v43 }
 0x1be   : > { %v682_v48 = vpop.f32.mrb[0].mxu1 }
 0x1bf   : > { %v683_v49 = vadd.f32 %v682_v48, %v2691_v46  ;;  %v684_v51 = vpop.f32.mrb[1].mxu1 }
 0x1c0   : > { %v685_v52 = vadd.f32 %v684_v51, %v2694_v47 }
 0x1c1   : > { %v777_v57 = vmax.f32 %v683_v49, 0.0 }
 0x1c2   : > { %v778_v53 = vmax.f32 %v685_v52, 0.0  ;;  %v688_v54 = vpop.f32.mrb[2].mxu1 }
 0x1c3   : > { %v689_v58 = vadd.f32 %v688_v54, %v2691_v46  ;;  %v690_v59 = vpop.f32.mrb[3].mxu1 }
 0x1c4   : > { %v691_v60 = vadd.f32 %v690_v59, %v2694_v47  ;;  %945 = vmatprep.mubr.f32.mxu0 %v778_v53 }
 0x1c5   : > { %946 = vmatmul.mubr.f32.vlgmr.msra.gmra.mrb[32].mxu0 %v777_v57  ;;  %v779_v24 = vmax.f32 %v689_v58, 0.0 }
 0x1c6   : > { %v780_v63 = vmax.f32 %v691_v60, 0.0  ;;  %v694_v23 = vpop.f32.mrb[4].mxu1  ;;  %1774 = vmatpush1.bf16.msra.mxu0 %v2449_v9 }
 0x1c7   : > { %v695_v0 = vadd.f32 %v694_v23, %v2691_v46  ;;  %v696_v3 = vpop.f32.mrb[5].mxu1  ;;  %1776 = vmatprep.subr.bf16.mxu0 %v2451_v10 }
 0x1c8   : > { %v697_v4 = vadd.f32 %v696_v3, %v2694_v47  ;;  %951 = vmatprep.mubr.f32.mxu0 %v780_v63 }
 0x1c9   : > { %952 = vmatmul.mubr.f32.gmra.mrb[34].mxu0 %v779_v24  ;;  %v781_v13 = vmax.f32 %v695_v0, 0.0 }
 0x1ca   : > { %v782_v6 = vmax.f32 %v697_v4, 0.0  ;;  %v700_v7 = vpop.f32.mrb[6].mxu1  ;;  %1778 = vmatpush1.bf16.msra.mxu0 %v2467_v16 }
 0x1cb   : > { %v701_v14 = vadd.f32 %v700_v7, %v2691_v46  ;;  %v702_v15 = vpop.f32.mrb[7].mxu1  ;;  %1780 = vmatprep.subr.bf16.mxu0 %v2469_v17 }
 0x1cc   : > { %v703_v9 = vadd.f32 %v702_v15, %v2694_v47  ;;  %957 = vmatprep.mubr.f32.mxu0 %v782_v6 }
 0x1cd   : > { %958 = vmatmul.mubr.f32.gmra.mrb[36].mxu0 %v781_v13  ;;  %v783_v25 = vmax.f32 %v701_v14, 0.0 }
 0x1ce   : > { %v784_v18 = vmax.f32 %v703_v9, 0.0  ;;  %v706_v10 = vpop.f32.mrb[8].mxu1  ;;  %1782 = vmatpush1.bf16.msra.mxu0 %v2485_v26 }
 0x1cf   : > { %v707_v28 = vadd.f32 %v706_v10, %v2691_v46  ;;  %v708_v29 = vpop.f32.mrb[9].mxu1  ;;  %1784 = vmatprep.subr.bf16.mxu0 %v2487_v27 }
 0x1d0   : > { %v709_v16 = vadd.f32 %v708_v29, %v2694_v47  ;;  %963 = vmatprep.mubr.f32.mxu0 %v784_v18 }
 0x1d1   : > { %964 = vmatmul.mubr.f32.gmra.mrb[38].mxu0 %v783_v25  ;;  %v785_v35 = vmax.f32 %v707_v28, 0.0 }
 0x1d2   : > { %v786_v30 = vmax.f32 %v709_v16, 0.0  ;;  %v712_v17 = vpop.f32.mrb[10].mxu1  ;;  %1786 = vmatpush1.bf16.msra.mxu0 %v2503_v32 }
 0x1d3   : > { %v713_v36 = vadd.f32 %v712_v17, %v2691_v46  ;;  %v714_v37 = vpop.f32.mrb[11].mxu1  ;;  %1788 = vmatprep.subr.bf16.mxu0 %v2505_v33 }
 0x1d4   : > { %v715_v26 = vadd.f32 %v714_v37, %v2694_v47  ;;  %969 = vmatprep.mubr.f32.mxu0 %v786_v30 }
 0x1d5   : > { %970 = vmatmul.mubr.f32.gmra.mrb[40].mxu0 %v785_v35  ;;  %v787_v41 = vmax.f32 %v713_v36, 0.0 }
 0x1d6   : > { %v788_v40 = vmax.f32 %v715_v26, 0.0  ;;  %v718_v27 = vpop.f32.mrb[12].mxu1  ;;  %1790 = vmatpush1.bf16.msra.mxu0 %v2521_v38 }
 0x1d7   : > { %v719_v48 = vadd.f32 %v718_v27, %v2691_v46  ;;  %v720_v49 = vpop.f32.mrb[13].mxu1  ;;  %1792 = vmatprep.subr.bf16.mxu0 %v2523_v39 }
 0x1d8   : > { %v721_v32 = vadd.f32 %v720_v49, %v2694_v47  ;;  %975 = vmatprep.mubr.f32.mxu0 %v788_v40 }
 0x1d9   : > { %976 = vmatmul.mubr.f32.gmra.mrb[42].mxu0 %v787_v41  ;;  %v789_v52 = vmax.f32 %v719_v48, 0.0 }
 0x1da   : > { %v790_v51 = vmax.f32 %v721_v32, 0.0  ;;  %v724_v33 = vpop.f32.mrb[14].mxu1  ;;  %1794 = vmatpush1.bf16.msra.mxu0 %v2539_v44  ;;  %v1130_v32 = vld [vmem:[%s2983_s3 + $0x5e0] sm:$0xff] }
 0x1db   : > { %v725_v53 = vadd.f32 %v724_v33, %v2691_v46  ;;  %v726_v54 = vpop.f32.mrb[15].mxu1  ;;  %1796 = vmatprep.subr.bf16.mxu0 %v2541_v45  ;;  %v1134_v33 = vld [vmem:[%s2983_s3 + $0x600] sm:$0xff] }
 0x1dc   : > { %v727_v38 = vadd.f32 %v726_v54, %v2694_v47  ;;  %981 = vmatprep.mubr.f32.mxu0 %v790_v51  ;;  %v875_v54 = vsub.s32 2, %v2356_v12 }
 0x1dd   : > { %982 = vmatmul.mubr.f32.gmra.mrb[44].mxu0 %v789_v52  ;;  %v791_v58 = vmax.f32 %v725_v53, 0.0  ;;  %v1136_v52 = vld [vmem:[%s2983_s3 + $0x610] sm:$0xff] }
 0x1de   : > { %v792_v57 = vmax.f32 %v727_v38, 0.0  ;;  %v730_v39 = vpop.f32.mrb[16].mxu1  ;;  %1798 = vmatpush1.bf16.msra.mxu0 %v2557_v50  ;;  %v1833_v53 = vpack.c.bf16 %v1136_v52, %v1134_v33  ;;  %v2776_v38 = vrot.slane %v2374_v20, %v875_v54 }
 0x1df   : > { %v731_v59 = vadd.f32 %v730_v39, %v2691_v46  ;;  %v732_v60 = vpop.f32.mrb[17].mxu1  ;;  %1800 = vmatprep.subr.bf16.mxu0 %v2559_v5 }
 0x1e0   : > { %v733_v44 = vadd.f32 %v732_v60, %v2694_v47  ;;  %987 = vmatprep.mubr.f32.mxu0 %v792_v57  ;;  %v2779_v57 = vrot.slane %v2379_v21, %v875_v54 }
 0x1e1   : > { %988 = vmatmul.mubr.f32.gmra.mrb[46].mxu0 %v791_v58  ;;  %v793_v23 = vmax.f32 %v731_v59, 0.0 }
 0x1e2   : > { %v794_v63 = vmax.f32 %v733_v44, 0.0  ;;  %v736_v45 = vpop.f32.mrb[18].mxu1  ;;  %1802 = vmatpush1.bf16.msra.mxu0 %v2575_v55 }
 0x1e3   : > { %v737_v24 = vadd.f32 %v736_v45, %v2691_v46  ;;  %v738_v0 = vpop.f32.mrb[19].mxu1  ;;  %1804 = vmatprep.subr.bf16.mxu0 %v2577_v56 }
 0x1e4   : > { %v739_v50 = vadd.f32 %v738_v0, %v2694_v47  ;;  %993 = vmatprep.mubr.f32.mxu0 %v794_v63 }
 0x1e5   : > { %994 = vmatmul.mubr.f32.gmra.mrb[48].mxu0 %v793_v23  ;;  %v795_v4 = vmax.f32 %v737_v24, 0.0 }
 0x1e6   : > { %v796_v3 = vmax.f32 %v739_v50, 0.0  ;;  %v742_v5 = vpop.f32.mrb[20].mxu1  ;;  %1806 = vmatpush1.bf16.msra.mxu0 %v2593_v61 }
 0x1e7   : > { %v743_v6 = vadd.f32 %v742_v5, %v2691_v46  ;;  %v744_v7 = vpop.f32.mrb[21].mxu1  ;;  %1808 = vmatprep.subr.bf16.mxu0 %v2595_v62 }
 0x1e8   : > { %v745_v55 = vadd.f32 %v744_v7, %v2694_v47  ;;  %999 = vmatprep.mubr.f32.mxu0 %v796_v3 }
 0x1e9   : > { %1000 = vmatmul.mubr.f32.gmra.mrb[50].mxu0 %v795_v4  ;;  %v797_v14 = vmax.f32 %v743_v6, 0.0 }
 0x1ea   : > { %v798_v13 = vmax.f32 %v745_v55, 0.0  ;;  %v748_v56 = vpop.f32.mrb[22].mxu1  ;;  %1810 = vmatpush1.bf16.msra.mxu0 %v2611_v1 }
 0x1eb   : > { %v749_v15 = vadd.f32 %v748_v56, %v2691_v46  ;;  %v750_v9 = vpop.f32.mrb[23].mxu1  ;;  %1812 = vmatprep.subr.bf16.mxu0 %v2613_v2 }
 0x1ec   : > { %v751_v61 = vadd.f32 %v750_v9, %v2694_v47  ;;  %1005 = vmatprep.mubr.f32.mxu0 %v798_v13 }
 0x1ed   : > { %1006 = vmatmul.mubr.f32.gmra.mrb[52].mxu0 %v797_v14  ;;  %v799_v10 = vmax.f32 %v749_v15, 0.0 }
 0x1ee   : > { %v800_v18 = vmax.f32 %v751_v61, 0.0  ;;  %v754_v62 = vpop.f32.mrb[24].mxu1  ;;  %1814 = vmatpush1.bf16.msra.mxu0 %v2629_v8 }
 0x1ef   : > { %v755_v25 = vadd.f32 %v754_v62, %v2691_v46  ;;  %v756_v28 = vpop.f32.mrb[25].mxu1  ;;  %1816 = vmatprep.subr.bf16.mxu0 %v2631_v11 }
 0x1f0   : > { %v757_v1 = vadd.f32 %v756_v28, %v2694_v47  ;;  %1011 = vmatprep.mubr.f32.mxu0 %v800_v18 }
 0x1f1   : > { %1012 = vmatmul.mubr.f32.gmra.mrb[54].mxu0 %v799_v10  ;;  %v801_v16 = vmax.f32 %v755_v25, 0.0 }
 0x1f2   : > { %v802_v29 = vmax.f32 %v757_v1, 0.0  ;;  %v760_v2 = vpop.f32.mrb[26].mxu1  ;;  %1818 = vmatpush1.bf16.msra.mxu0 %v2647_v19 }
 0x1f3   : > { %v761_v30 = vadd.f32 %v760_v2, %v2691_v46  ;;  %v762_v17 = vpop.f32.mrb[27].mxu1  ;;  %1820 = vmatprep.subr.bf16.mxu0 %v2649_v22 }
 0x1f4   : > { %v763_v8 = vadd.f32 %v762_v17, %v2694_v47  ;;  %1017 = vmatprep.mubr.f32.mxu0 %v802_v29 }
 0x1f5   : > { %1018 = vmatmul.mubr.f32.gmra.mrb[56].mxu0 %v801_v16  ;;  %v803_v36 = vmax.f32 %v761_v30, 0.0 }
 0x1f6   : > { %v804_v35 = vmax.f32 %v763_v8, 0.0  ;;  %v766_v11 = vpop.f32.mrb[28].mxu1  ;;  %1822 = vmatpush1.bf16.msra.mxu0 %v2665_v31 }
 0x1f7   : > { %v767_v37 = vadd.f32 %v766_v11, %v2691_v46  ;;  %v768_v26 = vpop.f32.mrb[29].mxu1  ;;  %1824 = vmatprep.subr.bf16.mxu0 %v2667_v34 }
 0x1f8   : > { %v769_v19 = vadd.f32 %v768_v26, %v2694_v47  ;;  %1023 = vmatprep.mubr.f32.mxu0 %v804_v35 }
 0x1f9   : > { %1024 = vmatmul.mubr.f32.gmra.mrb[58].mxu0 %v803_v36  ;;  %v805_v27 = vmax.f32 %v767_v37, 0.0 }
 0x1fa   : > { %v806_v40 = vmax.f32 %v769_v19, 0.0  ;;  %v772_v22 = vpop.f32.mrb[30].mxu1  ;;  %1826 = vmatpush1.bf16.msra.mxu0 %v2684_v42  ;;  %v1132_v42 = vld [vmem:[%s2983_s3 + $0x5f0] sm:$0xff] }
 0x1fb   : > { %v773_v41 = vadd.f32 %v772_v22, %v2691_v46  ;;  %v774_v48 = vpop.f32.mrb[31].mxu1  ;;  %1828 = vmatprep.subr.bf16.mxu0 %v2686_v43  ;;  %v1829_v46 = vpack.c.bf16 %v1132_v42, %v1130_v32  ;;  %v1135_v43 = vld [vmem:[%s2983_s3 + $0x608] sm:$0xff] }
 0x1fc   : > { %v775_v31 = vadd.f32 %v774_v48, %v2694_v47  ;;  %1029 = vmatprep.mubr.f32.mxu0 %v806_v40  ;;  %v1137_v47 = vld [vmem:[%s2983_s3 + $0x618] sm:$0xff] }
 0x1fd   : > { %1030 = vmatmul.mubr.f32.gmra.mrb[60].mxu0 %v805_v27  ;;  %v807_v34 = vmax.f32 %v773_v41, 0.0  ;;  %1865 = vmatpush1.bf16.msra.mxu1 %v1829_v46  ;;  %v1831_v51 = vpack.c.bf16 %v1137_v47, %v1135_v43 }
 0x1fe   : > { %v808_v49 = vmax.f32 %v775_v31, 0.0  ;;  %1830 = vmatpush1.bf16.msra.mxu0 %v1829_v46 }
 0x1ff   : > { %1832 = vmatprep.subr.bf16.mxu0 %v1831_v51  ;;  %1850 = vmatprep.subr.bf16.mxu1 %v1831_v51 }
 0x200   : > { %1035 = vmatprep.mubr.f32.mxu0 %v808_v49 }
 0x201   : > { %1036 = vmatmul.mubr.f32.gmra.mrb[62].mxu0 %v807_v34  ;;  %1866 = vmatpush1.bf16.msra.mxu1 %v1833_v53 }
 0x202   : > { %1834 = vmatpush1.bf16.msra.mxu0 %v1833_v53 }
 0x298   : > { %v947_v39 = vpop.f32.mrb[32].mxu0 }
 0x299   : > { %v948_v58 = vadd.f32 %v947_v39, %v2776_v38  ;;  %v949_v59 = vpop.f32.mrb[33].mxu0 }
 0x29a   : > { %v950_v60 = vadd.f32 %v949_v59, %v2779_v57 }
 0x29b   : > { %v1042_v45 = vmax.f32 %v948_v58, 0.0 }
 0x29c   : > { %v1043_v44 = vmax.f32 %v950_v60, 0.0  ;;  %v953_v63 = vpop.f32.mrb[34].mxu0 }
 0x29d   : > { %v954_v23 = vadd.f32 %v953_v63, %v2776_v38  ;;  %v955_v24 = vpop.f32.mrb[35].mxu0 }
 0x29e   : > { %v956_v0 = vadd.f32 %v955_v24, %v2779_v57  ;;  %1206 = vmatprep.mubr.f32.mxu0 %v1043_v44 }
 0x29f   : > { %1207 = vmatmul.mubr.f32.vlgmr.msra.gmra.mrb[64].mxu0 %v1042_v45  ;;  %v1044_v21 = vmax.f32 %v954_v23, 0.0 }
 0x2a0   : > { %v1045_v20 = vmax.f32 %v956_v0, 0.0  ;;  %v959_v50 = vpop.f32.mrb[36].mxu0 }
 0x2a1   : > { %v960_v3 = vadd.f32 %v959_v50, %v2776_v38  ;;  %v961_v5 = vpop.f32.mrb[37].mxu0 }
 0x2a2   : > { %v962_v4 = vadd.f32 %v961_v5, %v2779_v57  ;;  %1211 = vmatprep.mubr.f32.mxu0 %v1045_v20 }
 0x2a3   : > { %1212 = vmatmul.mubr.f32.gmra.mrb[66].mxu0 %v1044_v21  ;;  %v1046_v55 = vmax.f32 %v960_v3, 0.0 }
 0x2a4   : > { %v1047_v6 = vmax.f32 %v962_v4, 0.0  ;;  %v965_v7 = vpop.f32.mrb[38].mxu0 }
 0x2a5   : > { %v966_v13 = vadd.f32 %v965_v7, %v2776_v38  ;;  %v967_v56 = vpop.f32.mrb[39].mxu0 }
 0x2a6   : > { %v968_v14 = vadd.f32 %v967_v56, %v2779_v57  ;;  %1216 = vmatprep.mubr.f32.mxu0 %v1047_v6 }
 0x2a7   : > { %1217 = vmatmul.mubr.f32.gmra.mrb[68].mxu0 %v1046_v55  ;;  %v1048_v61 = vmax.f32 %v966_v13, 0.0 }
 0x2a8   : > { %v1049_v15 = vmax.f32 %v968_v14, 0.0  ;;  %v971_v9 = vpop.f32.mrb[40].mxu0 }
 0x2a9   : > { %v972_v18 = vadd.f32 %v971_v9, %v2776_v38  ;;  %v973_v62 = vpop.f32.mrb[41].mxu0 }
 0x2aa   : > { %v974_v10 = vadd.f32 %v973_v62, %v2779_v57  ;;  %1221 = vmatprep.mubr.f32.mxu0 %v1049_v15 }
 0x2ab   : > { %1222 = vmatmul.mubr.f32.gmra.mrb[70].mxu0 %v1048_v61  ;;  %v1050_v1 = vmax.f32 %v972_v18, 0.0 }
 0x2ac   : > { %v1051_v25 = vmax.f32 %v974_v10, 0.0  ;;  %v977_v28 = vpop.f32.mrb[42].mxu0 }
 0x2ad   : > { %v978_v29 = vadd.f32 %v977_v28, %v2776_v38  ;;  %v979_v2 = vpop.f32.mrb[43].mxu0 }
 0x2ae   : > { %v980_v16 = vadd.f32 %v979_v2, %v2779_v57  ;;  %1226 = vmatprep.mubr.f32.mxu0 %v1051_v25 }
 0x2af   : > { %1227 = vmatmul.mubr.f32.gmra.mrb[72].mxu0 %v1050_v1  ;;  %v1052_v8 = vmax.f32 %v978_v29, 0.0 }
 0x2b0   : > { %v1053_v30 = vmax.f32 %v980_v16, 0.0  ;;  %v983_v17 = vpop.f32.mrb[44].mxu0 }
 0x2b1   : > { %v984_v35 = vadd.f32 %v983_v17, %v2776_v38  ;;  %v985_v11 = vpop.f32.mrb[45].mxu0  ;;  %v1140_v17 = vsub.s32 3, %v2356_v12  ;;  %v1303_v12 = vld [vmem:[%s2818_s10] sm:$0xff] }
 0x2b2   : > { %v986_v36 = vadd.f32 %v985_v11, %v2779_v57  ;;  %1231 = vmatprep.mubr.f32.mxu0 %v1053_v30 }
 0x2b3   : > { %1232 = vmatmul.mubr.f32.gmra.mrb[74].mxu0 %v1052_v8  ;;  %v1054_v19 = vmax.f32 %v984_v35, 0.0  ;;  %v1319_v8 = vld [vmem:[%s2824_s13] sm:$0xff] }
 0x2b4   : > { %v1055_v37 = vmax.f32 %v986_v36, 0.0  ;;  %v989_v26 = vpop.f32.mrb[46].mxu0 }
 0x2b5   : > { %v990_v40 = vadd.f32 %v989_v26, %v2776_v38  ;;  %v991_v22 = vpop.f32.mrb[47].mxu0  ;;  %v1304_v26 = vld [vmem:[%s2818_s10 + $0x8] sm:$0xff] }
 0x2b6   : > { %v992_v27 = vadd.f32 %v991_v22, %v2779_v57  ;;  %1236 = vmatprep.mubr.f32.mxu0 %v1055_v37  ;;  %v1335_v37 = vsub.f32 %v1303_v12, %v1319_v8 }
 0x2b7   : > { %1237 = vmatmul.mubr.f32.gmra.mrb[76].mxu0 %v1054_v19  ;;  %v1056_v31 = vmax.f32 %v990_v40, 0.0  ;;  %v1320_v19 = vld [vmem:[%s2824_s13 + $0x8] sm:$0xff] }
 0x2b8   : > { %v1057_v41 = vmax.f32 %v992_v27, 0.0  ;;  %v995_v48 = vpop.f32.mrb[48].mxu0 }
 0x2b9   : > { %v996_v49 = vadd.f32 %v995_v48, %v2776_v38  ;;  %v997_v34 = vpop.f32.mrb[49].mxu0 }
 0x2ba   : > { %v998_v32 = vadd.f32 %v997_v34, %v2779_v57  ;;  %1241 = vmatprep.mubr.f32.mxu1 %v1057_v41  ;;  %v1321_v34 = vld [vmem:[%s2824_s13 + $0x10] sm:$0xff] }
 0x2bb   : > { %1242 = vmatmul.mubr.f32.vlgmr.msra.gmra.mrb[32].mxu1 %v1056_v31  ;;  %v1058_v43 = vmax.f32 %v996_v49, 0.0  ;;  %v1336_v31 = vsub.f32 %v1304_v26, %v1320_v19  ;;  %v1305_v49 = vld [vmem:[%s2818_s10 + $0x10] sm:$0xff]  ;;  %v1311_v19 = vld [vmem:[%s2818_s10 + $0x40] sm:$0xff] }
 0x2bc   : > { %v1059_v42 = vmax.f32 %v998_v32, 0.0  ;;  %v1001_v46 = vpop.f32.mrb[50].mxu0 }
 0x2bd   : > { %v1002_v47 = vadd.f32 %v1001_v46, %v2776_v38  ;;  %v1003_v51 = vpop.f32.mrb[51].mxu0 }
 0x2be   : > { %v1004_v33 = vadd.f32 %v1003_v51, %v2779_v57  ;;  %1246 = vmatprep.mubr.f32.mxu1 %v1059_v42 }
 0x2bf   : > { %1247 = vmatmul.mubr.f32.gmra.mrb[34].mxu1 %v1058_v43  ;;  %v1060_v54 = vmax.f32 %v1002_v47, 0.0 }
 0x2c0   : > { %v1061_v52 = vmax.f32 %v1004_v33, 0.0  ;;  %v1007_v53 = vpop.f32.mrb[52].mxu0  ;;  %v1337_v33 = vsub.f32 %v1305_v49, %v1321_v34 }
 0x2c1   : > { %v1008_v39 = vadd.f32 %v1007_v53, %v2776_v38  ;;  %v1009_v58 = vpop.f32.mrb[53].mxu0  ;;  %v1322_v53 = vld [vmem:[%s2824_s13 + $0x18] sm:$0xff] }
 0x2c2   : > { %v1010_v59 = vadd.f32 %v1009_v58, %v2779_v57  ;;  %1251 = vmatprep.mubr.f32.mxu1 %v1061_v52  ;;  %v1306_v52 = vld [vmem:[%s2818_s10 + $0x18] sm:$0xff] }
 0x2c3   : > { %1252 = vmatmul.mubr.f32.gmra.mrb[36].mxu1 %v1060_v54  ;;  %v1062_v63 = vmax.f32 %v1008_v39, 0.0 }
 0x2c4   : > { %v1063_v60 = vmax.f32 %v1010_v59, 0.0  ;;  %v1013_v44 = vpop.f32.mrb[54].mxu0 }
 0x2c5   : > { %v1014_v45 = vadd.f32 %v1013_v44, %v2776_v38  ;;  %v1015_v23 = vpop.f32.mrb[55].mxu0 }
 0x2c6   : > { %v1016_v24 = vadd.f32 %v1015_v23, %v2779_v57  ;;  %1256 = vmatprep.mubr.f32.mxu1 %v1063_v60  ;;  %v1323_v23 = vld [vmem:[%s2824_s13 + $0x20] sm:$0xff] }
 0x2c7   : > { %1257 = vmatmul.mubr.f32.gmra.mrb[38].mxu1 %v1062_v63  ;;  %v1064_v50 = vmax.f32 %v1014_v45, 0.0  ;;  %v1338_v63 = vsub.f32 %v1306_v52, %v1322_v53  ;;  %v1307_v45 = vld [vmem:[%s2818_s10 + $0x20] sm:$0xff] }
 0x2c8   : > { %v1065_v0 = vmax.f32 %v1016_v24, 0.0  ;;  %v1019_v20 = vpop.f32.mrb[56].mxu0 }
 0x2c9   : > { %v1020_v21 = vadd.f32 %v1019_v20, %v2776_v38  ;;  %v1021_v3 = vpop.f32.mrb[57].mxu0 }
 0x2ca   : > { %v1022_v5 = vadd.f32 %v1021_v3, %v2779_v57  ;;  %1261 = vmatprep.mubr.f32.mxu1 %v1065_v0 }
 0x2cb   : > { %1262 = vmatmul.mubr.f32.gmra.mrb[40].mxu1 %v1064_v50  ;;  %v1066_v7 = vmax.f32 %v1020_v21, 0.0 }
 0x2cc   : > { %v1067_v4 = vmax.f32 %v1022_v5, 0.0  ;;  %v1025_v6 = vpop.f32.mrb[58].mxu0  ;;  %v1339_v5 = vsub.f32 %v1307_v45, %v1323_v23 }
 0x2cd   : > { %v1026_v55 = vadd.f32 %v1025_v6, %v2776_v38  ;;  %v1027_v13 = vpop.f32.mrb[59].mxu0  ;;  %v1324_v6 = vld [vmem:[%s2824_s13 + $0x28] sm:$0xff] }
 0x2ce   : > { %v1028_v56 = vadd.f32 %v1027_v13, %v2779_v57  ;;  %1266 = vmatprep.mubr.f32.mxu1 %v1067_v4  ;;  %v1308_v4 = vld [vmem:[%s2818_s10 + $0x28] sm:$0xff] }
 0x2cf   : > { %1267 = vmatmul.mubr.f32.gmra.mrb[42].mxu1 %v1066_v7  ;;  %v1068_v9 = vmax.f32 %v1026_v55, 0.0 }
 0x2d0   : > { %v1069_v14 = vmax.f32 %v1028_v56, 0.0  ;;  %v1031_v15 = vpop.f32.mrb[60].mxu0 }
 0x2d1   : > { %v1032_v61 = vadd.f32 %v1031_v15, %v2776_v38  ;;  %v1033_v18 = vpop.f32.mrb[61].mxu0 }
 0x2d2   : > { %v1034_v62 = vadd.f32 %v1033_v18, %v2779_v57  ;;  %1271 = vmatprep.mubr.f32.mxu1 %v1069_v14  ;;  %v1325_v18 = vld [vmem:[%s2824_s13 + $0x30] sm:$0xff] }
 0x2d3   : > { %1272 = vmatmul.mubr.f32.gmra.mrb[44].mxu1 %v1068_v9  ;;  %v1070_v28 = vmax.f32 %v1032_v61, 0.0  ;;  %v1340_v9 = vsub.f32 %v1308_v4, %v1324_v6  ;;  %v1309_v61 = vld [vmem:[%s2818_s10 + $0x30] sm:$0xff] }
 0x2d4   : > { %v1071_v10 = vmax.f32 %v1034_v62, 0.0  ;;  %v1037_v25 = vpop.f32.mrb[62].mxu0 }
 0x2d5   : > { %v1038_v1 = vadd.f32 %v1037_v25, %v2776_v38  ;;  %v1039_v29 = vpop.f32.mrb[63].mxu0  ;;  %v1879_v38 = vld [vmem:[%s2984_s4] sm:$0xff]  ;;  %v1889_v25 = vmov 3  }
 0x2d6   : > { %v1040_v2 = vadd.f32 %v1039_v29, %v2779_v57  ;;  %1276 = vmatprep.mubr.f32.mxu1 %v1071_v10  ;;  %v2829_v57 = vrot.slane %v1879_v38, %v1140_v17  ;;  %1877 = vset.pattern.permute.xlu0 %v1889_v25  ;;  %v1326_v17 = vld [vmem:[%s2824_s13 + $0x38] sm:$0xff] }
 0x2d7   : > { %1277 = vmatmul.mubr.f32.gmra.mrb[46].mxu1 %v1070_v28  ;;  %v1072_v30 = vmax.f32 %v1038_v1, 0.0  ;;  %1878 = vset.pattern.permute.xlu1 %v1889_v25 }
 0x2d8   : > { %v1073_v16 = vmax.f32 %v1040_v2, 0.0 }
 0x2da   : > { %1281 = vmatprep.mubr.f32.mxu1 %v1073_v16  ;;  %v1341_v16 = vsub.f32 %v1309_v61, %v1325_v18 }
 0x2db   : > { %1282 = vmatmul.mubr.f32.gmra.mrb[48].mxu1 %v1072_v30  ;;  %v1310_v30 = vld [vmem:[%s2818_s10 + $0x38] sm:$0xff] }
 0x2dc   : > { %v1342_v26 = vsub.f32 %v1310_v30, %v1326_v17 }
 0x372   : > { %v1208_v35 = vpop.f32.mrb[64].mxu0 }
 0x373   : > { %v2834_v11 = vadd.f32 %v1208_v35, %v2829_v57  ;;  %v1210_v36 = vpop.f32.mrb[65].mxu0 }
 0x375   : > { %v1287_v40 = vand.u32 2147483647, %v2834_v11 }
 0x376   : > { %v1213_v22 = vpop.f32.mrb[66].mxu0 }
 0x377   : > { %v2840_v27 = vadd.f32 %v1213_v22, %v2829_v57  ;;  %v1215_v41 = vpop.f32.mrb[67].mxu0  ;;  %v1351_v48 = vmul.f32 %v1335_v37, %v1287_v40  ;;  %v1327_v40 = vld [vmem:[%s2824_s13 + $0x40] sm:$0xff] }
 0x379   : > { %v1288_v32 = vand.u32 2147483647, %v2840_v27  ;;  %v1368_v42 = vsel %vm1367_vm1, %v1351_v48, 0.0 }
 0x37a   : > { %v1218_v46 = vpop.f32.mrb[68].mxu0  ;;  %1369 = vadd.xlane.f32.xlu0 %v1368_v42  ;;  %v1312_v42 = vld [vmem:[%s2818_s10 + $0x48] sm:$0xff] }
 0x37b   : > { %v2847_v43 = vadd.f32 %v1218_v46, %v2829_v57  ;;  %v1220_v47 = vpop.f32.mrb[69].mxu0  ;;  %v1352_v51 = vmul.f32 %v1336_v31, %v1288_v32  ;;  %v1343_v32 = vsub.f32 %v1311_v19, %v1327_v40  ;;  %v1328_v46 = vld [vmem:[%s2824_s13 + $0x48] sm:$0xff]  ;;  %v1333_v19 = vld [vmem:[%s2824_s13 + $0x70] sm:$0xff] }
 0x37d   : > { %v1289_v54 = vand.u32 2147483647, %v2847_v43  ;;  %v1371_v39 = vsel %vm1367_vm1, %v1352_v51, 0.0 }
 0x37e   : > { %v1223_v58 = vpop.f32.mrb[70].mxu0  ;;  %1372 = vadd.xlane.f32.xlu0 %v1371_v39  ;;  %v1344_v39 = vsub.f32 %v1312_v42, %v1328_v46  ;;  %v1318_v42 = vld [vmem:[%s2818_s10 + $0x78] sm:$0xff] }
 0x37f   : > { %v2854_v59 = vadd.f32 %v1223_v58, %v2829_v57  ;;  %v1225_v60 = vpop.f32.mrb[71].mxu0  ;;  %v1353_v44 = vmul.f32 %v1337_v33, %v1289_v54  ;;  %v1313_v58 = vld [vmem:[%s2818_s10 + $0x50] sm:$0xff]  ;;  %v1334_v46 = vld [vmem:[%s2824_s13 + $0x78] sm:$0xff] }
 0x380   : > { %v1329_v60 = vld [vmem:[%s2824_s13 + $0x50] sm:$0xff] }
 0x381   : > { %v1290_v24 = vand.u32 2147483647, %v2854_v59  ;;  %v1374_v0 = vsel %vm1367_vm1, %v1353_v44, 0.0 }
 0x382   : > { %v1228_v20 = vpop.f32.mrb[72].mxu0  ;;  %1375 = vadd.xlane.f32.xlu1 %v1374_v0 }
 0x383   : > { %v2861_v50 = vadd.f32 %v1228_v20, %v2829_v57  ;;  %v1230_v21 = vpop.f32.mrb[73].mxu0  ;;  %v1354_v3 = vmul.f32 %v1338_v63, %v1290_v24  ;;  %v1345_v20 = vsub.f32 %v1313_v58, %v1329_v60  ;;  %v1350_v58 = vsub.f32 %v1318_v42, %v1334_v46 }
 0x384   : > { %v1314_v21 = vld [vmem:[%s2818_s10 + $0x58] sm:$0xff] }
 0x385   : > { %v1291_v7 = vand.u32 2147483647, %v2861_v50  ;;  %v1377_v55 = vsel %vm1367_vm1, %v1354_v3, 0.0  ;;  %v1330_v3 = vld [vmem:[%s2824_s13 + $0x58] sm:$0xff] }
 0x386   : > { %v1233_v13 = vpop.f32.mrb[74].mxu0  ;;  %1378 = vadd.xlane.f32.xlu1 %v1377_v55 }
 0x387   : > { %v2868_v56 = vadd.f32 %v1233_v13, %v2829_v57  ;;  %v1235_v14 = vpop.f32.mrb[75].mxu0  ;;  %v1355_v15 = vmul.f32 %v1339_v5, %v1291_v7 }
 0x388   : > { %v1346_v14 = vsub.f32 %v1314_v21, %v1330_v3 }
 0x389   : > { %v1292_v62 = vand.u32 2147483647, %v2868_v56  ;;  %v1380_v10 = vsel %vm1367_vm1, %v1355_v15, 0.0  ;;  %v1315_v15 = vld [vmem:[%s2818_s10 + $0x60] sm:$0xff] }
 0x38a   : > { %v1238_v28 = vpop.f32.mrb[76].mxu0  ;;  %1381 = vadd.xlane.f32.xlu0 %v1380_v10 }
 0x38b   : > { %v2875_v1 = vadd.f32 %v1238_v28, %v2829_v57  ;;  %v1240_v29 = vpop.f32.mrb[77].mxu0  ;;  %v1356_v2 = vmul.f32 %v1340_v9, %v1292_v62  ;;  %v1331_v9 = vld [vmem:[%s2824_s13 + $0x60] sm:$0xff] }
 0x38c   : > { %v1347_v29 = vsub.f32 %v1315_v15, %v1331_v9 }
 0x38d   : > { %v1293_v38 = vand.u32 2147483647, %v2875_v1  ;;  %v1383_v12 = vsel %vm1367_vm1, %v1356_v2, 0.0  ;;  %v1316_v2 = vld [vmem:[%s2818_s10 + $0x68] sm:$0xff] }
 0x38e   : > { %v1243_v8 = vpop.f32.mrb[32].mxu1  ;;  %1384 = vadd.xlane.f32.xlu1 %v1383_v12 }
 0x38f   : > { %v2882_v35 = vadd.f32 %v1243_v8, %v2829_v57  ;;  %v1245_v36 = vpop.f32.mrb[33].mxu1  ;;  %v1357_v37 = vmul.f32 %v1341_v16, %v1293_v38  ;;  %v1332_v16 = vld [vmem:[%s2824_s13 + $0x68] sm:$0xff] }
 0x391   : > { %v1294_v22 = vand.u32 2147483647, %v2882_v35  ;;  %v1386_v41 = vsel %vm1367_vm1, %v1357_v37, 0.0  ;;  %v1348_v37 = vsub.f32 %v1316_v2, %v1332_v16 }
 0x392   : > { %v1248_v48 = vpop.f32.mrb[34].mxu1  ;;  %1387 = vadd.xlane.f32.xlu0 %v1386_v41 }
 0x393   : > { %v2889_v31 = vadd.f32 %v1248_v48, %v2829_v57  ;;  %v1250_v49 = vpop.f32.mrb[35].mxu1  ;;  %v1358_v34 = vmul.f32 %v1342_v26, %v1294_v22  ;;  %v1317_v26 = vld [vmem:[%s2818_s10 + $0x70] sm:$0xff] }
 0x395   : > { %v1295_v47 = vand.u32 2147483647, %v2889_v31  ;;  %v1389_v51 = vsel %vm1367_vm1, %v1358_v34, 0.0 }
 0x396   : > { %v1253_v33 = vpop.f32.mrb[36].mxu1  ;;  %1390 = vadd.xlane.f32.xlu1 %v1389_v51 }
 0x397   : > { %v2896_v52 = vadd.f32 %v1253_v33, %v2829_v57  ;;  %v1255_v53 = vpop.f32.mrb[37].mxu1  ;;  %v1359_v54 = vmul.f32 %v1343_v32, %v1295_v47  ;;  %v1349_v32 = vsub.f32 %v1317_v26, %v1333_v19 }
 0x399   : > { %v1296_v44 = vand.u32 2147483647, %v2896_v52  ;;  %v1392_v63 = vsel %vm1367_vm1, %v1359_v54, 0.0 }
 0x39a   : > { %v1258_v45 = vpop.f32.mrb[38].mxu1  ;;  %1393 = vadd.xlane.f32.xlu0 %v1392_v63 }
 0x39b   : > { %v2903_v23 = vadd.f32 %v1258_v45, %v2829_v57  ;;  %v1260_v24 = vpop.f32.mrb[39].mxu1  ;;  %v1360_v0 = vmul.f32 %v1344_v39, %v1296_v44 }
 0x39d   : > { %v1297_v5 = vand.u32 2147483647, %v2903_v23  ;;  %v1395_v4 = vsel %vm1367_vm1, %v1360_v0, 0.0 }
 0x39e   : > { %v1263_v6 = vpop.f32.mrb[40].mxu1  ;;  %1396 = vadd.xlane.f32.xlu1 %v1395_v4 }
 0x39f   : > { %v2910_v7 = vadd.f32 %v1263_v6, %v2829_v57  ;;  %v1265_v55 = vpop.f32.mrb[41].mxu1  ;;  %v1361_v13 = vmul.f32 %v1345_v20, %v1297_v5 }
 0x3a1   : > { %v1298_v61 = vand.u32 2147483647, %v2910_v7  ;;  %v1398_v18 = vsel %vm1367_vm1, %v1361_v13, 0.0 }
 0x3a2   : > { %v1268_v62 = vpop.f32.mrb[42].mxu1  ;;  %1399 = vadd.xlane.f32.xlu0 %v1398_v18 }
 0x3a3   : > { %v2917_v10 = vadd.f32 %v1268_v62, %v2829_v57  ;;  %v1270_v25 = vpop.f32.mrb[43].mxu1  ;;  %v1362_v28 = vmul.f32 %v1346_v14, %v1298_v61 }
 0x3a5   : > { %v1299_v30 = vand.u32 2147483647, %v2917_v10  ;;  %v1401_v17 = vsel %vm1367_vm1, %v1362_v28, 0.0 }
 0x3a6   : > { %v1273_v38 = vpop.f32.mrb[44].mxu1  ;;  %1402 = vadd.xlane.f32.xlu1 %v1401_v17 }
 0x3a7   : > { %v2924_v12 = vadd.f32 %v1273_v38, %v2829_v57  ;;  %v1275_v8 = vpop.f32.mrb[45].mxu1  ;;  %v1363_v36 = vmul.f32 %v1347_v29, %v1299_v30 }
 0x3a9   : > { %v1300_v40 = vand.u32 2147483647, %v2924_v12  ;;  %v1404_v22 = vsel %vm1367_vm1, %v1363_v36, 0.0 }
 0x3aa   : > { %v1278_v41 = vpop.f32.mrb[46].mxu1  ;;  %1405 = vadd.xlane.f32.xlu0 %v1404_v22 }
 0x3ab   : > { %v2931_v48 = vadd.f32 %v1278_v41, %v2829_v57  ;;  %v1280_v49 = vpop.f32.mrb[47].mxu1  ;;  %v1364_v34 = vmul.f32 %v1348_v37, %v1300_v40 }
 0x3ad   : > { %v1301_v47 = vand.u32 2147483647, %v2931_v48  ;;  %v1407_v51 = vsel %vm1367_vm1, %v1364_v34, 0.0 }
 0x3ae   : > { %v1283_v33 = vpop.f32.mrb[48].mxu1  ;;  %1408 = vadd.xlane.f32.xlu1 %v1407_v51 }
 0x3af   : > { %v1284_v53 = vadd.f32 %v1283_v33, %v2829_v57  ;;  %v1285_v54 = vpop.f32.mrb[49].mxu1  ;;  %v1365_v39 = vmul.f32 %v1349_v32, %v1301_v47 }
 0x3b1   : > { %v1302_v60 = vand.u32 2147483647, %v1284_v53  ;;  %v1410_v44 = vsel %vm1367_vm1, %v1365_v39, 0.0 }
 0x3b2   : > { %1411 = vadd.xlane.f32.xlu0 %v1410_v44 }
 0x3b3   : > { %v1366_v63 = vmul.f32 %v1350_v58, %v1302_v60 }
 0x3b5   : > { %v1413_v45 = vsel %vm1367_vm1, %v1366_v63, 0.0 }
 0x3b6   : > { %1414 = vadd.xlane.f32.xlu1 %v1413_v45 }
 0x407   : > { %v1370_v24 = vpop.xlane.xlu0 %1369 }
 0x408   : > { %v1416_v0 = vadd.f32 %v1370_v24, %v2834_v11 }
 0x40a   : > { %1434 = vperm.xlu0 %1877, %v1416_v0  }
 0x40b   : > { %v1373_v20 = vpop.xlane.xlu0 %1372 }
 0x40c   : > { %v1417_v21 = vadd.f32 %v1373_v20, %v2840_v27 }
 0x40e   : > { %1439 = vperm.xlu1 %1878, %v1417_v21  }
 0x40f   : > { %v1376_v57 = vpop.xlane.xlu1 %1375 }
 0x410   : > { %v1418_v3 = vadd.f32 %v1376_v57, %v2847_v43 }
 0x412   : > { %1444 = vperm.xlu1 %1878, %v1418_v3  }
 0x413   : > { %v1379_v5 = vpop.xlane.xlu1 %1378 }
 0x414   : > { %v1419_v4 = vadd.f32 %v1379_v5, %v2854_v59 }
 0x416   : > { %1449 = vperm.xlu1 %1878, %v1419_v4  }
 0x417   : > { %v1382_v6 = vpop.xlane.xlu0 %1381 }
 0x418   : > { %v1420_v55 = vadd.f32 %v1382_v6, %v2861_v50 }
 0x41a   : > { %1454 = vperm.xlu1 %1878, %v1420_v55  }
 0x41b   : > { %v1385_v13 = vpop.xlane.xlu1 %1384 }
 0x41c   : > { %v1421_v11 = vadd.f32 %v1385_v13, %v2868_v56 }
 0x41e   : > { %1459 = vperm.xlu1 %1878, %v1421_v11  }
 0x41f   : > { %v1388_v14 = vpop.xlane.xlu0 %1387 }
 0x420   : > { %v1422_v27 = vadd.f32 %v1388_v14, %v2875_v1 }
 0x422   : > { %1464 = vperm.xlu1 %1878, %v1422_v27  }
 0x423   : > { %v1391_v15 = vpop.xlane.xlu1 %1390 }
 0x424   : > { %v1423_v43 = vadd.f32 %v1391_v15, %v2882_v35 }
 0x426   : > { %1469 = vperm.xlu1 %1878, %v1423_v43  }
 0x427   : > { %v1394_v9 = vpop.xlane.xlu0 %1393 }
 0x428   : > { %v1424_v59 = vadd.f32 %v1394_v9, %v2889_v31 }
 0x42a   : > { %1474 = vperm.xlu1 %1878, %v1424_v59  }
 0x42b   : > { %v1397_v61 = vpop.xlane.xlu1 %1396 }
 0x42c   : > { %v1425_v50 = vadd.f32 %v1397_v61, %v2896_v52 }
 0x42e   : > { %1479 = vperm.xlu0 %1877, %v1425_v50  }
 0x42f   : > { %v1400_v18 = vpop.xlane.xlu0 %1399 }
 0x430   : > { %v1426_v56 = vadd.f32 %v1400_v18, %v2903_v23 }
 0x432   : > { %1484 = vperm.xlu1 %1878, %v1426_v56  }
 0x433   : > { %v1403_v62 = vpop.xlane.xlu1 %1402 }
 0x434   : > { %v1427_v1 = vadd.f32 %v1403_v62, %v2910_v7 }
 0x436   : > { %1489 = vperm.xlu0 %1877, %v1427_v1  }
 0x437   : > { %v1406_v25 = vpop.xlane.xlu0 %1405 }
 0x438   : > { %v1428_v35 = vadd.f32 %v1406_v25, %v2917_v10 }
 0x43a   : > { %1494 = vperm.xlu1 %1878, %v1428_v35  }
 0x43b   : > { %v1409_v28 = vpop.xlane.xlu1 %1408 }
 0x43c   : > { %v1429_v31 = vadd.f32 %v1409_v28, %v2924_v12 }
 0x43e   : > { %1499 = vperm.xlu0 %1877, %v1429_v31  }
 0x43f   : > { %v1412_v29 = vpop.xlane.xlu0 %1411 }
 0x440   : > { %v1430_v52 = vadd.f32 %v1412_v29, %v2931_v48 }
 0x442   : > { %1504 = vperm.xlu1 %1878, %v1430_v52  }
 0x443   : > { %v1415_v2 = vpop.xlane.xlu1 %1414 }
 0x444   : > { %v1431_v23 = vadd.f32 %v1415_v2, %v1284_v53 }
 0x446   : > { %1509 = vperm.xlu0 %1877, %v1431_v23  }
 0x489   : > { %v1435_v7 = vpop.permute.xlu0 %1434 }
 0x48a   : > { %1512 = vst [vmem:[%s2959_s19] sm:$0xff] %v1435_v7 }
 0x48d   : > { %v1440_v10 = vpop.permute.xlu1 %1439 }
 0x48e   : > { %1513 = vst [vmem:[%s2959_s19 + $0x8] sm:$0xff] %v1440_v10 }
 0x491   : > { %v1445_v16 = vpop.permute.xlu1 %1444 }
 0x492   : > { %1514 = vst [vmem:[%s2959_s19 + $0x10] sm:$0xff] %v1445_v16 }
 0x495   : > { %v1450_v30 = vpop.permute.xlu1 %1449 }
 0x496   : > { %1515 = vst [vmem:[%s2959_s19 + $0x18] sm:$0xff] %v1450_v30 }
 0x499   : > { %v1455_v17 = vpop.permute.xlu1 %1454 }
 0x49a   : > { %1516 = vst [vmem:[%s2959_s19 + $0x20] sm:$0xff] %v1455_v17 }
 0x49d   : > { %v1460_v38 = vpop.permute.xlu1 %1459 }
 0x49e   : > { %1517 = vst [vmem:[%s2959_s19 + $0x28] sm:$0xff] %v1460_v38 }
 0x4a1   : > { %v1465_v12 = vpop.permute.xlu1 %1464 }
 0x4a2   : > { %1518 = vst [vmem:[%s2959_s19 + $0x30] sm:$0xff] %v1465_v12 }
 0x4a5   : > { %v1470_v8 = vpop.permute.xlu1 %1469 }
 0x4a6   : > { %1519 = vst [vmem:[%s2959_s19 + $0x38] sm:$0xff] %v1470_v8 }
 0x4a9   : > { %v1475_v36 = vpop.permute.xlu1 %1474 }
 0x4aa   : > { %1520 = vst [vmem:[%s2959_s19 + $0x40] sm:$0xff] %v1475_v36 }
 0x4ad   : > { %v1480_v37 = vpop.permute.xlu0 %1479 }
 0x4ae   : > { %1521 = vst [vmem:[%s2959_s19 + $0x48] sm:$0xff] %v1480_v37 }
 0x4b1   : > { %v1485_v26 = vpop.permute.xlu1 %1484 }
 0x4b2   : > { %1522 = vst [vmem:[%s2959_s19 + $0x50] sm:$0xff] %v1485_v26 }
 0x4b5   : > { %v1490_v19 = vpop.permute.xlu0 %1489 }
 0x4b6   : > { %1523 = vst [vmem:[%s2959_s19 + $0x58] sm:$0xff] %v1490_v19 }
 0x4b9   : > { %v1495_v40 = vpop.permute.xlu1 %1494 }
 0x4ba   : > { %1524 = vst [vmem:[%s2959_s19 + $0x60] sm:$0xff] %v1495_v40 }
 0x4bd   : > { %v1500_v22 = vpop.permute.xlu0 %1499 }
 0x4be   : > { %1525 = vst [vmem:[%s2959_s19 + $0x68] sm:$0xff] %v1500_v22 }
 0x4c1   : > { %v1505_v41 = vpop.permute.xlu1 %1504 }
 0x4c2   : > { %1526 = vst [vmem:[%s2959_s19 + $0x70] sm:$0xff] %v1505_v41 }
 0x4c5   : > { %v1510_v48 = vpop.permute.xlu0 %1509 }
 0x4c6   : > { %1527 = vst [vmem:[%s2959_s19 + $0x78] sm:$0xff] %v1510_v48 }
 0x4c7 PF: > { %s15_s18 = sadd.s32 1, %s1886_s18  }
 0x4c8   : > { %p12_p4 = scmp.ge.s32.totalorder %s15_s18, 4  }
 0x4ca   :  { %14 = sbr.rel (!%p12_p4) target bundleno = 1 (0x1), region = 76 }

</bundles_post_ra>
